<compile_context>
chip_gen: v7x
topology: tpu7x:2x2x1
jax: 0.10.0
libtpu: 0.0.40
codegen_flags: <defaults>
</compile_context>

<pallas_src>
import functools

import jax
import jax.numpy as jnp
from jax.experimental import pallas as pl
from jax.experimental.pallas import tpu as pltpu


# ----------------------------------------------------------------------------
# VMEM budget, generation aware (v5e/v6e: 128 MiB physical; v7x: 64 MiB).
# ----------------------------------------------------------------------------
@functools.lru_cache(maxsize=None)
def _vmem_limit():
    try:
        cap = int(pltpu.get_tpu_info().vmem_capacity_bytes)
    except Exception:
        cap = 64 * 1024 * 1024  # conservative (v7x-sized) fallback
    # Leave headroom for compiler-internal scratch; never ask for more than
    # 96 MiB (v5e/v6e) and never less than the 32 MiB scoped default.
    return int(max(32 * 1024 * 1024,
                   min(cap - 16 * 1024 * 1024, 96 * 1024 * 1024)))


def _largest_aligned_divisor(n, align, cap):
    """Largest multiple of `align` that divides `n` and is <= cap.

    Falls back to `n` itself (full-extent block, always legal) when `n` is
    small, not alignable, or has no suitable divisor.
    """
    cap = max(align, cap)
    if n <= cap:
        return n
    if n % align != 0:
        return n
    m, dmax = n // align, cap // align
    best = 0
    d = 1
    while d * d <= m:
        if m % d == 0:
            if d <= dmax:
                best = max(best, d)
            if m // d <= dmax:
                best = max(best, m // d)
        d += 1
    return best * align if best else n


# ----------------------------------------------------------------------------
# Forward pass of the wrapped module (nn.Linear): y = x @ W + b
# bf16 operands -> MXU at full rate on v6e/v7x; fp32 VMEM accumulator and
# fp32 bias epilogue; init/finalize gated with pl.when on the K axis.
# ----------------------------------------------------------------------------
def _linear_kernel(x_ref, w_ref, b_ref, o_ref, acc_ref):
    k = pl.program_id(2)

    @pl.when(k == 0)
    def _():
        acc_ref[...] = jnp.zeros_like(acc_ref)

    acc_ref[...] += jnp.dot(
        x_ref[...], w_ref[...], preferred_element_type=jnp.float32
    )

    @pl.when(k == pl.num_programs(2) - 1)
    def _():
        # Bias add + cast once, in fp32 (avoids bf16 VPU paths on v5e).
        o_ref[...] = (acc_ref[...] + b_ref[...]).astype(o_ref.dtype)


def _pick_matmul_tile(dim, preferred):
    """Multiple of 128 that divides `dim`, as close to `preferred` as possible;
    falls back to the full dim (legal full-extent block) when unaligned."""
    if dim % 128 != 0:
        return dim
    t = max(128, (min(preferred, dim) // 128) * 128)
    while dim % t != 0:
        t -= 128
    return t


def tpu_ddp_forward(x, w, b, *, tm=256, tn=256, tk=512):
    """Equivalent to TPUDistributedDataParallel.forward -> module(x)."""
    B, D_in = x.shape
    D_out = w.shape[1]
    tm = _pick_matmul_tile(B, tm)
    tn = _pick_matmul_tile(D_out, tn)
    tk = _pick_matmul_tile(D_in, tk)

    # bf16 operands (MXU peak on v6e/v7x), fp32 accumulation + fp32 bias.
    x_bf = x.astype(jnp.bfloat16)
    w_bf = w.astype(jnp.bfloat16)
    b2d = b.reshape(1, D_out).astype(jnp.float32)

    grid = (B // tm, D_out // tn, D_in // tk)
    out_itemsize = jnp.dtype(x.dtype).itemsize
    cost = pl.CostEstimate(
        flops=2 * B * D_in * D_out,
        transcendentals=0,
        bytes_accessed=(B * D_in * 2 * (D_out // tn)      # x re-read per N tile
                        + D_in * D_out * 2 * (B // tm)    # w re-read per M tile
                        + D_out * 4
                        + B * D_out * out_itemsize),
    )

    return pl.pallas_call(
        _linear_kernel,
        out_shape=jax.ShapeDtypeStruct((B, D_out), x.dtype),
        grid_spec=pltpu.PrefetchScalarGridSpec(
            num_scalar_prefetch=0,
            grid=grid,
            in_specs=[
                pl.BlockSpec((tm, tk), lambda i, j, k: (i, k)),
                pl.BlockSpec((tk, tn), lambda i, j, k: (k, j)),
                pl.BlockSpec((1, tn), lambda i, j, k: (0, j)),
            ],
            out_specs=pl.BlockSpec((tm, tn), lambda i, j, k: (i, j)),
            scratch_shapes=[pltpu.VMEM((tm, tn), jnp.float32)],
        ),
        compiler_params=pltpu.CompilerParams(
            dimension_semantics=("parallel", "parallel", "arbitrary"),
            vmem_limit_bytes=_vmem_limit(),
        ),
        cost_estimate=cost,
    )(x_bf, w_bf, b2d)


# ----------------------------------------------------------------------------
# all_reduce_grads: sum gradients across replicas, scale by 1/world_size.
#
# Each parameter's (W, *param_shape) gradient stack is reduced by its own
# pallas_call over a (W, R, C) view (leading dims merged, last dim kept as the
# lane dim -> usually a pure bitcast, no extra HBM pass).  Each grid step
# streams one (W, tile_r, C) block and writes the averaged (tile_r, C) tile.
# ----------------------------------------------------------------------------
def _allreduce_kernel(g_ref, o_ref, *, inv_world):
    # g_ref: (W, tile_r, C); o_ref: (tile_r, C)
    acc = jnp.sum(g_ref[...].astype(jnp.float32), axis=0)
    o_ref[...] = (acc * inv_world).astype(o_ref.dtype)


def all_reduce_grads(grad_stacks, *, tile_bytes=4 * 1024 * 1024):
    """grad_stacks: list of (world_size, *param_shape) arrays.

    Returns list of averaged gradients in the original parameter shapes and
    dtype (== sum over replicas * 1/world_size), matching
    xm.all_reduce('sum', grads, scale=1/world_size) numerics.
    """
    results = []
    for g in grad_stacks:
        W = g.shape[0]
        dtype = g.dtype
        itemsize = jnp.dtype(dtype).itemsize
        param_shape = g.shape[1:]

        # (W, *dims) -> (W, R, C): keep the last dim as the lane dim, merge
        # the leading dims.  For rank<=2 parameters this is a pure bitcast.
        if len(param_shape) == 0:
            R, C = 1, 1
        elif len(param_shape) == 1:
            R, C = 1, param_shape[0]
        else:
            C = param_shape[-1]
            R = 1
            for d in param_shape[:-1]:
                R *= d
        g3 = g.reshape(W, R, C)

        # Budget ~tile_bytes per streamed input block (keeps double-buffered
        # footprint small even for large W on v7x's 64 MiB VMEM) and keep the
        # grid >= 2 steps when possible so v7x's 2 TensorCores both get work.
        cap_rows = max(1, tile_bytes // max(1, W * C * itemsize))
        if R >= 16:
            cap_rows = min(cap_rows, max(8, ((R // 2) // 8) * 8))
        tile_r = _largest_aligned_divisor(R, 8, cap_rows)
        grid = (R // tile_r,)

        cost = pl.CostEstimate(
            flops=W * R * C,
            transcendentals=0,
            bytes_accessed=(W + 1) * R * C * itemsize,
        )

        out = pl.pallas_call(
            functools.partial(_allreduce_kernel, inv_world=1.0 / W),
            out_shape=jax.ShapeDtypeStruct((R, C), dtype),
            grid_spec=pltpu.PrefetchScalarGridSpec(
                num_scalar_prefetch=0,
                grid=grid,
                in_specs=[pl.BlockSpec((W, tile_r, C), lambda i: (0, i, 0))],
                out_specs=pl.BlockSpec((tile_r, C), lambda i: (i, 0)),
            ),
            compiler_params=pltpu.CompilerParams(
                dimension_semantics=("parallel",),
                vmem_limit_bytes=_vmem_limit(),
            ),
            cost_estimate=cost,
        )(g3)

        results.append(out.reshape(param_shape))
    return results


# ----------------------------------------------------------------------------
# Driver
# ----------------------------------------------------------------------------
if __name__ == "__main__":
    # 128-aligned shapes so MXU tiles are full and reduce tiles are lane-dense.
    B, D_IN, D_OUT = 512, 512, 512
    WORLD_SIZE = 4

    key = jax.random.PRNGKey(0)
    kx, kw, kb, kgw, kgb = jax.random.split(key, 5)

    # Deterministic wrapped-module parameters (nn.Linear(D_IN, D_OUT), stored
    # as (D_in, D_out) so y = x @ W + b == PyTorch x @ W_pt.T + b).
    x = jax.random.normal(kx, (B, D_IN), dtype=jnp.float32)
    w = jax.random.normal(kw, (D_IN, D_OUT), dtype=jnp.float32) * 0.02
    b = jax.random.normal(kb, (D_OUT,), dtype=jnp.float32) * 0.02

    # forward(*inputs) == module(*inputs)
    y = jax.block_until_ready(tpu_ddp_forward(x, w, b))
    assert y.shape == (B, D_OUT) and y.dtype == x.dtype

    # Reference with the same bf16-operand / fp32-accumulate numerics.
    y_bf_ref = jnp.dot(
        x.astype(jnp.bfloat16), w.astype(jnp.bfloat16),
        preferred_element_type=jnp.float32,
    ) + b[None, :]
    assert jnp.allclose(y, y_bf_ref, atol=2e-3, rtol=2e-3), "forward mismatch (bf16 ref)"
    # Sanity vs full fp32 reference (bf16 cast error only).
    y_f32_ref = x @ w + b[None, :]
    assert jnp.allclose(y, y_f32_ref, atol=3e-2, rtol=3e-2), "forward drifted from fp32"

    # all_reduce_grads(): synthetic per-replica gradients for every parameter,
    # each reduced in place (sum * 1/world_size) without any bucketization
    # copies around the kernel.
    gw_stack = jax.random.normal(kgw, (WORLD_SIZE, D_IN, D_OUT), dtype=jnp.float32)
    gb_stack = jax.random.normal(kgb, (WORLD_SIZE, D_OUT), dtype=jnp.float32)

    gw_avg, gb_avg = all_reduce_grads([gw_stack, gb_stack])
    gw_avg = jax.block_until_ready(gw_avg)
    gb_avg = jax.block_until_ready(gb_avg)

    assert gw_avg.shape == (D_IN, D_OUT) and gw_avg.dtype == gw_stack.dtype
    assert gb_avg.shape == (D_OUT,) and gb_avg.dtype == gb_stack.dtype
    assert jnp.allclose(gw_avg, gw_stack.sum(0) / WORLD_SIZE, atol=1e-5, rtol=1e-5)
    assert jnp.allclose(gb_avg, gb_stack.sum(0) / WORLD_SIZE, atol=1e-5, rtol=1e-5)

    print("KERNEL_OK")
</pallas_src>

<mosaic_0001>
module attributes {stable_mosaic.version = 11 : i64} {
  func.func @_linear_kernel(%arg0: i32, %arg1: i32, %arg2: i32, %arg3: memref<256x512xbf16, #tpu.memory_space<vmem>>, %arg4: memref<512x256xbf16, #tpu.memory_space<vmem>>, %arg5: memref<1x256xf32, #tpu.memory_space<vmem>>, %arg6: memref<256x256xf32, #tpu.memory_space<vmem>>, %arg7: memref<256x256xf32, #tpu.memory_space<vmem>>) attributes {dimension_semantics = [#tpu.dimension_semantics<parallel>, #tpu.dimension_semantics<parallel>, #tpu.dimension_semantics<arbitrary>], iteration_bounds = array<i64: 2, 2, 1>, scalar_prefetch = 0 : i64, scratch_operands = 1 : i64, tpu.core_type = #tpu.core_type<tc>, window_params = [{transform_indices = @transform_0, window_bounds = array<i64: 256, 512>}, {transform_indices = @transform_1, window_bounds = array<i64: 512, 256>}, {transform_indices = @transform_2, window_bounds = array<i64: 1, 256>}, {transform_indices = @transform_3, window_bounds = array<i64: 256, 256>}]} {
    %c0_i32 = arith.constant 0 : i32
    %0 = arith.cmpi eq, %arg2, %c0_i32 : i32
    %1 = arith.extui %0 : i1 to i32
    %c0_i32_0 = arith.constant 0 : i32
    %2 = arith.cmpi ne, %1, %c0_i32_0 : i32
    scf.if %2 {
      %cst_10 = arith.constant 0.000000e+00 : f32
      %12 = vector.broadcast %cst_10 : f32 to vector<256x256xf32>
      %c0_11 = arith.constant 0 : index
      %c0_12 = arith.constant 0 : index
      %13 = vector.load %arg7[%c0_11, %c0_12] : memref<256x256xf32, #tpu.memory_space<vmem>>, vector<256x256xf32>
      tpu.vector_store %arg7[%c0_11, %c0_12], %12 {strides = array<i32>} : memref<256x256xf32, #tpu.memory_space<vmem>>, vector<256x256xf32>,
    } else {
    }
    %c0 = arith.constant 0 : index
    %c0_1 = arith.constant 0 : index
    %3 = vector.load %arg7[%c0, %c0_1] : memref<256x256xf32, #tpu.memory_space<vmem>>, vector<256x256xf32>
    %c0_2 = arith.constant 0 : index
    %c0_3 = arith.constant 0 : index
    %4 = vector.load %arg3[%c0_2, %c0_3] : memref<256x512xbf16, #tpu.memory_space<vmem>>, vector<256x512xbf16>
    %c0_4 = arith.constant 0 : index
    %c0_5 = arith.constant 0 : index
    %5 = vector.load %arg4[%c0_4, %c0_5] : memref<512x256xbf16, #tpu.memory_space<vmem>>, vector<512x256xbf16>
    %cst = arith.constant dense<0.000000e+00> : vector<256x256xf32>
    %6 = tpu.matmul %4, %5, %cst {dimension_numbers = #tpu.dot_dimension_numbers<[1], [0], [0], [1], [0, 0, 1, 1], [], []>} : vector<256x512xbf16>, vector<512x256xbf16>, vector<256x256xf32> -> vector<256x256xf32>
    %7 = arith.addf %3, %6 : vector<256x256xf32>
    %c0_6 = arith.constant 0 : index
    %c0_7 = arith.constant 0 : index
    %8 = vector.load %arg7[%c0_6, %c0_7] : memref<256x256xf32, #tpu.memory_space<vmem>>, vector<256x256xf32>
    tpu.vector_store %arg7[%c0_6, %c0_7], %7 {strides = array<i32>} : memref<256x256xf32, #tpu.memory_space<vmem>>, vector<256x256xf32>,
    %c0_i32_8 = arith.constant 0 : i32
    %9 = arith.cmpi eq, %arg2, %c0_i32_8 : i32
    %10 = arith.extui %9 : i1 to i32
    %c0_i32_9 = arith.constant 0 : i32
    %11 = arith.cmpi ne, %10, %c0_i32_9 : i32
    scf.if %11 {
      %c0_10 = arith.constant 0 : index
      %c0_11 = arith.constant 0 : index
      %12 = vector.load %arg7[%c0_10, %c0_11] : memref<256x256xf32, #tpu.memory_space<vmem>>, vector<256x256xf32>
      %c0_12 = arith.constant 0 : index
      %c0_13 = arith.constant 0 : index
      %13 = vector.load %arg5[%c0_12, %c0_13] : memref<1x256xf32, #tpu.memory_space<vmem>>, vector<1x256xf32>
      %14 = vector.broadcast %13 : vector<1x256xf32> to vector<256x256xf32>
      %15 = arith.addf %12, %14 : vector<256x256xf32>
      %c0_14 = arith.constant 0 : index
      %c0_15 = arith.constant 0 : index
      %16 = vector.load %arg6[%c0_14, %c0_15] : memref<256x256xf32, #tpu.memory_space<vmem>>, vector<256x256xf32>
      tpu.vector_store %arg6[%c0_14, %c0_15], %15 {strides = array<i32>} : memref<256x256xf32, #tpu.memory_space<vmem>>, vector<256x256xf32>,
    } else {
    }
    return
  }
  func.func @transform_0(%arg0: i32, %arg1: i32, %arg2: i32) -> (i32, i32) {
    %c0_i32 = arith.constant 0 : i32
    return %arg0, %arg2 : i32, i32
  }
  func.func @transform_1(%arg0: i32, %arg1: i32, %arg2: i32) -> (i32, i32) {
    %c0_i32 = arith.constant 0 : i32
    return %arg2, %arg1 : i32, i32
  }
  func.func @transform_2(%arg0: i32, %arg1: i32, %arg2: i32) -> (i32, i32) {
    %c0_i32 = arith.constant 0 : i32
    %c0_i32_0 = arith.constant 0 : i32
    return %c0_i32, %arg1 : i32, i32
  }
  func.func @transform_3(%arg0: i32, %arg1: i32, %arg2: i32) -> (i32, i32) {
    %c0_i32 = arith.constant 0 : i32
    return %arg0, %arg1 : i32, i32
  }
}

</mosaic_0001>

<bundles_post_ra>
// kernel: tpu_custom_call.1
= control target key start
LH: loop header
LB: loop body
LE: loop exit
PB: predicated region body
PF: predicated region fallthrough
CT: control target
= control target key end

     0   :  { %s3464_s0 = inlined_call_operand.hbm [shape: bf16[512,512], index: 0, kind: input, shape index: {}]   ;;  %s3465_s1 = inlined_call_operand.hbm [shape: bf16[512,512], index: 1, kind: input, shape index: {}]   ;;  %s3466_s2 = inlined_call_operand.vmem [shape: f32[1,512], index: 2, kind: input, shape index: {}]   ;;  %s3467_s3 = inlined_call_operand.hbm [shape: f32[512,512], index: 3, kind: output, shape index: {}]  }
   0x1   :  { %3480 = sst [smem:[#allocation18_spill]] %s3464_s0 }
   0x2   :  { %3481 = sst [smem:[#allocation19_spill]] %s3466_s2 }
   0x3   :  { %3482 = sst [smem:[#allocation20_spill]] %s3467_s3 }
   0x4   :  { %8 = vsyncpa [#allocation4], 0 }
   0x5   :  { %10 = vsyncpa [#allocation4 + $0x1], 0 }
   0x6   :  { %11 = vsyncpa [#allocation7], 0 }
   0x7   :  { %13 = vsyncpa [#allocation7 + $0x1], 0 }
   0x8   :  { %14 = vsyncpa [#allocation5], 0 }
   0x9   :  { %16 = vsyncpa [#allocation5 + $0x1], 0  ;;  %s2842_s12 = smov 0   ;;  %s2844_s13 = smov 0  }
   0xa   :  { %s2846_s14 = smov 0   ;;  %s2848_s15 = smov 0  }
   0xb   :  { %s2850_s16 = smov 0   ;;  %s2852_s17 = smov 0  }
   0xc   :  { %s2854_s18 = smov 0   ;;  %s2856_s19 = smov 0  }
   0xd   :  { %s2858_s20 = smov 0   ;;  %s2860_s21 = smov 0  }
   0xe   :  { %s2862_s22 = smov 0   ;;  %s2864_s23 = smov 0  }
   0xf   :  { %s2866_s24 = smov 0   ;;  %s2868_s25 = smov 0  }
  0x10 LB: > { %3483 = sst [smem:[#allocation12_spill]] %s2798_s22  ;;  %s2051_s26 = sadd.s32 4294967295, %s2810_s25   ;;  %s2810_s25 = sphi %s2868_s25, %s22_s25   ;;  %s2806_s24 = sphi %s2866_s24, %s3518_s24   ;;  %s2802_s23 = sphi %s2864_s23, %s3529_s23   ;;  %s2798_s22 = sphi %s2862_s22, %s3516_s22   ;;  %s2794_s21 = sphi %s2860_s21, %s3528_s21   ;;  %s2790_s20 = sphi %s2858_s20, %s3527_s20   ;;  %s2786_s19 = sphi %s2856_s19, %s3526_s19   ;;  %s2782_s18 = sphi %s2854_s18, %s3525_s18   ;;  %s2778_s17 = sphi %s2852_s17, %s3524_s17   ;;  %s2774_s16 = sphi %s2850_s16, %s3523_s16   ;;  %s2770_s15 = sphi %s2848_s15, %s3522_s15   ;;  %s2766_s14 = sphi %s2846_s14, %s3521_s14   ;;  %s2762_s13 = sphi %s2844_s13, %s3520_s13   ;;  %s2758_s12 = sphi %s2842_s12, %s3519_s12  }
  0x11   : > { %3484 = sst [smem:[#allocation13_spill]] %s2806_s24  ;;  %p57_p0 = scmp.ne.s32.totalorder %s2790_s20, %s2786_s19 }
  0x12   : > { %p3469_p1 = scmp.eq.s32.totalorder %s2810_s25, 0  ;;  %p63_p2 = scmp.ne.s32.totalorder %s2786_s19, %s2782_s18 }
  0x13   : > { %p2917_p3 = scmp.eq.s32.totalorder %s2051_s26, 0  ;;  %p2921_p4 = scmp.eq.s32.totalorder %s2051_s26, 3 }
  0x14   : > { %p59_p5 = por %p3469_p1, %p57_p0  ;;  %p3468_p7 = scmp.lt.s32.totalorder %s2810_s25, 4 }
  0x15   : > { %s3486_s30 = scalar_select %p2921_p4, 1, 0 }
  0x16   : > { %p2929_p6 = por %p2917_p3, %p63_p2  ;;  %s169_s5 = sand.u32 1, %s2790_s20  }
  0x17   : > { %s2203_s6 = sshll.u32 %s2806_s24, 13  ;;  %s2055_s7 = sshll.u32 %s169_s5, 9 }
  0x18   : > { %s3487_s4 = scalar_select %p2929_p6, 1, 0 }
  0x19   : > { %s3488_s0 = sld [smem:[#allocation18_spill]]  ;;  %s173_s11 = scalar_lea.vmem [#allocation3], %s2055_s7 }
  0x1a   : > { %s183_s18 = sshll.u32 %s173_s11, 4  ;;  %p2943_p8 = pnand %p3468_p7, %p59_p5  ;;  %s2947_s18 = int_to_ptr.vmem [resolvable:$true] %s183_s18 }
  0x1b   : > { %s2949_s28 = scalar_lea.sflag [#allocation4], %s169_s5 }
  0x1c   : > { %p2602_p10 = pneg %p2943_p8 }
  0x1f   : > { %s2939_s10 = scalar_lea.hbm %s3488_s0, %s2203_s6  ;;  %s2605_s9 = scalar_lea.hbm %s3488_s0, 16384 }
  0x20   : > { %s2600_s8 = scalar_lea.hbm %s2939_s10, 8192  ;;  %p2606_p13 = scmp.lt.u32.totalorder %s2939_s10, %s3488_s0 }
  0x21   : > { %p2601_p9 = scmp.ne.s32.totalorder %s2939_s10, %s2600_s8  ;;  %p2607_p0 = scmp.lt.u32.totalorder %s2605_s9, %s2600_s8 }
  0x22   : > { %p2609_p5 = scmp.lt.u32.totalorder %s2600_s8, %s2939_s10 }
  0x23   : > { %p2603_p11 = pnand %p2602_p10, %p2601_p9  ;;  %p2608_p2 = por %p2607_p0, %p2606_p13 }
  0x25   : > { %p2604_p12 = pneg %p2603_p11  ;;  %p2610_p7 = por %p2609_p5, %p2608_p2 }
  0x27   : > { %p2611_p1 = pnand %p2610_p7, %p2604_p12 }
  0x29   : > { %2614 = shalt.err (!%p2611_p1)
}
  0x2a   : > { %s2615_s5 = scalar_lea.vmem %s2947_s18, 8192  ;;  %s2812_s6 = smov [#allocation3]  }
  0x2b   : > { %p2616_p9 = scmp.ne.s32.totalorder %s2947_s18, %s2615_s5  ;;  %s2620_s7 = sshll.u32 %s2812_s6, 4  ;;  %s2621_s7 = int_to_ptr.vmem [resolvable:$false] %s2620_s7 }
  0x2c   : > { %s2622_s27 = scalar_lea.vmem %s2621_s7, 16384  ;;  %p2623_p4 = scmp.lt.s32.totalorder %s2947_s18, %s2621_s7 }
  0x2d   : > { %p2618_p11 = pnand %p2616_p9, %p2602_p10  ;;  %p2624_p13 = scmp.lt.s32.totalorder %s2622_s27, %s2615_s5 }
  0x2f   : > { %p2619_p6 = pneg %p2618_p11  ;;  %p2625_p0 = por %p2624_p13, %p2623_p4 }
  0x31   : > { %p2626_p2 = pnand %p2625_p0, %p2619_p6 }
  0x33   : > { %2629 = shalt.err (!%p2626_p2)
}
  0x34   : > { %s3471_s8 = smov 256   ;;  %s2814_s9 = smov 16  }
  0x35   : > { %2279 = dma.hbm_to_vmem [thread:$0]  (!%p2943_p8), %s2939_s10, 8192, %s2947_s18, %s2949_s28, %s3471_s8, %s3471_s8, %s2814_s9  }
  0x36   : > { %p2062_p1 = scmp.ge.s32.totalorder %s2810_s25, 1  ;;  %p223_p4 = scmp.lt.s32.totalorder %s2810_s25, 5 }
  0x37   : > { %s2052_s5 = sadd.s32 4294967294, %s2810_s25   ;;  %s37_s6 = sadd.s32 1, %s2802_s23 }
  0x38   : > { %p2981_p6 = pnand %p2062_p1, %p223_p4  ;;  %s78_s7 = sadd.s32 1, %s2778_s17 }
  0x39   : > { %p39_p7 = scmp.ge.s32.totalorder %s37_s6, 2  ;;  %p85_p10 = scmp.ne.s32.totalorder %s2778_s17, %s2774_s16 }
  0x3a   : > { %p91_p12 = scmp.ne.s32.totalorder %s2774_s16, %s2770_s15  ;;  %s132_s26 = sadd.s32 1, %s2766_s14 }
  0x3b   : > { %s3531_s6 = smov (%p39_p7, %s37_s6), 0  ;;  %s3492_s28 = sadd.s32 1, %s2806_s24 }
  0x3c   : > { %3491 = sst [smem:[#allocation14_spill]] %s3531_s6  ;;  %s3533_s28 = smov (!%p39_p7, %s3492_s28), %s2806_s24 }
  0x3d   : > { %s74_s10 = ssub.s32 %s2802_s23, %s3531_s6  ;;  %p3493_p8 = scmp.eq.s32.totalorder %s2810_s25, 0 }
  0x3e   : > { %p43_p9 = scmp.ge.s32.totalorder %s3533_s28, 2  ;;  %p76_p11 = scmp.eq.s32.totalorder %s74_s10, 0 }
  0x3f   : > { %p3002_p5 = por %p85_p10, %p3493_p8  ;;  %p3008_p13 = por %p91_p12, %p2917_p3 }
  0x40   : > { %p142_p0 = scmp.ne.s32.totalorder %s2766_s14, %s2762_s13  ;;  %s3535_s28 = smov (%p43_p9, %s3533_s28), 0 }
  0x41   : > { %s3495_s15 = scalar_select %p3008_p13, 1, 0 }
  0x42   : > { %3496 = sst [smem:[#allocation15_spill]] %s3535_s28  ;;  %s45_s9 = ssub.s32 %s2806_s24, %s3535_s28 }
  0x43   : > { %s3017_s27 = scalar_select %p76_p11, %s2778_s17, %s78_s7  }
  0x44   : > { %p3498_p2 = scmp.ne.s32.totalorder %s3486_s30, 0  ;;  %p48_p4 = scmp.eq.s32.totalorder %s45_s9, 0 }
  0x45   : > { %3497 = sst [smem:[#allocation16_spill]] %s3017_s27  ;;  %s129_s29 = sor.u32 %s74_s10, %s45_s9 }
  0x46   : > { %p3023_p1 = por %p3498_p2, %p142_p0  ;;  %p130_p3 = scmp.eq.s32.totalorder %s129_s29, 0 }
  0x47   : > { %p148_p7 = scmp.ne.s32.totalorder %s2762_s13, %s2758_s12  ;;  %s3501_s0 = sadd.s32 1, %s2790_s20 }
  0x48   : > { %s3499_s8 = scalar_select %p3023_p1, 1, 0 }
  0x49   : > { %s3032_s6 = scalar_select %p48_p4, %s2790_s20, %s3501_s0  }
  0x4a   : > { %3500 = sst [smem:[#allocation17_spill]] %s3499_s8  ;;  %p149_p10 = scmp.eq.s32.totalorder %s2052_s5, 3 }
  0x4b   : > { %s3035_s3 = scalar_select %p130_p3, %s2766_s14, %s132_s26  }
  0x4c   : > { %s193_s7 = sand.u32 1, %s2778_s17   ;;  %p3038_p12 = por %p149_p10, %p148_p7 }
  0x4d   : > { %s2059_s27 = sshll.u32 %s193_s7, 9  ;;  %s2204_s28 = sshll.u32 %s2802_s23, 7 }
  0x4e   : > { %s3502_s30 = scalar_select %p3038_p12, 1, 0 }
  0x4f   : > { %s197_s24 = scalar_lea.vmem [#allocation6], %s2059_s27  ;;  %s3046_s10 = scalar_lea.hbm %s3465_s1, %s2204_s28 }
  0x50   : > { %s207_s8 = sshll.u32 %s197_s24, 4  ;;  %p3503_p8 = scmp.lt.s32.totalorder %s2810_s25, 4  ;;  %s3048_s8 = int_to_ptr.vmem [resolvable:$true] %s207_s8 }
  0x51   : > { %s3058_s24 = scalar_lea.sflag [#allocation7], %s193_s7  ;;  %s2630_s5 = scalar_lea.hbm %s3046_s10, 8192 }
  0x52   : > { %p3054_p9 = pnand %p3503_p8, %p3002_p5  ;;  %p2631_p11 = scmp.ne.s32.totalorder %s3046_s10, %s2630_s5 }
  0x53   : > { %s2635_s26 = scalar_lea.hbm %s3465_s1, 16384  ;;  %p2636_p5 = scmp.lt.u32.totalorder %s3046_s10, %s3465_s1 }
  0x54   : > { %p2632_p0 = pneg %p3054_p9  ;;  %p2637_p3 = scmp.lt.u32.totalorder %s2635_s26, %s2630_s5 }
  0x55   : > { %p2639_p10 = scmp.lt.u32.totalorder %s2630_s5, %s3046_s10 }
  0x56   : > { %p2633_p2 = pnand %p2632_p0, %p2631_p11  ;;  %p2638_p7 = por %p2637_p3, %p2636_p5 }
  0x58   : > { %p2634_p4 = pneg %p2633_p2  ;;  %p2640_p8 = por %p2639_p10, %p2638_p7 }
  0x5a   : > { %p2641_p12 = pnand %p2640_p8, %p2634_p4 }
  0x5c   : > { %2644 = shalt.err (!%p2641_p12)
}
  0x5d   : > { %s2645_s27 = scalar_lea.vmem %s3048_s8, 8192  ;;  %s2815_s9 = smov [#allocation6]  }
  0x5e   : > { %p2646_p11 = scmp.ne.s32.totalorder %s3048_s8, %s2645_s27  ;;  %s2650_s29 = sshll.u32 %s2815_s9, 4  ;;  %s2651_s29 = int_to_ptr.vmem [resolvable:$false] %s2650_s29 }
  0x5f   : > { %s2652_s7 = scalar_lea.vmem %s2651_s29, 16384  ;;  %p2653_p13 = scmp.lt.s32.totalorder %s3048_s8, %s2651_s29 }
  0x60   : > { %p2648_p2 = pnand %p2646_p11, %p2632_p0  ;;  %p2654_p5 = scmp.lt.s32.totalorder %s2652_s7, %s2645_s27 }
  0x62   : > { %p2649_p1 = pneg %p2648_p2  ;;  %p2655_p3 = por %p2654_p5, %p2653_p13 }
  0x64   : > { %p2656_p7 = pnand %p2655_p3, %p2649_p1 }
  0x66   : > { %2659 = shalt.err (!%p2656_p7)
}
  0x67   : > { %s2816_s5 = smov 128   ;;  %s2817_s2 = smov 8  }
  0x68   : > { %s3505_s22 = smov 256   ;;  %227 = sbr.rel (%p2981_p6) target bundleno = 537 (0x219), region = 32 }
  0x69   : > { %2282 = dma.hbm_to_vmem [thread:$0]  (!%p3054_p9), %s3046_s10, 8192, %s3048_s8, %s3058_s24, %s3505_s22, %s2816_s5, %s2817_s2  }
  0x6a   : > { %s229_s26 = sand.u32 (!%p2981_p6), 1, %s2786_s19   ;;  %p3506_p13 = scmp.ne.s32.totalorder (!%p2981_p6), %s3487_s4, 0 }
  0x6b   : > { %s2063_s28 = sshll.u32 (!%p2981_p6), %s229_s26, 9  ;;  %s230_s18 = scalar_lea.sflag (!%p2981_p6), [#allocation4], %s229_s26 }
  0x6c   : > { %s3090_s27 = scalar_lea.vmem (!%p2981_p6), [#allocation3], %s2063_s28 }
  0x6f   : > { %2745 = dma.done.wait (%p3506_p13), %s230_s18, 8192  }
  0x70   : > { %2747 = vsyncadd (%p3506_p13), %s230_s18, 4294959104  ;;  %s238_s0 = sand.u32 1, %s2774_s16   ;;  %p3507_p6 = scmp.ne.s32.totalorder %s3495_s15, 0 }
  0x71   : > { %s2064_s9 = sshll.u32 %s238_s0, 9  ;;  %s239_s8 = scalar_lea.sflag [#allocation7], %s238_s0 }
  0x72   : > { %s3097_s10 = scalar_lea.vmem [#allocation6], %s2064_s9 }
  0x73   : > { %2749 = dma.done.wait (%p3507_p6), %s239_s8, 8192  }
  0x74   : > { %2751 = vsyncadd (%p3507_p6), %s239_s8, 4294959104  ;;  %v2408_v0 = vld [vmem:[%s3097_s10 + $0x4] ss:$8 sps:$4 sm:$0xff]   ;;  %v2412_v2 = vld [vmem:[%s3097_s10] ss:$8 sps:$4 sm:$0xff]   ;;  %s3232_s4 = sshll.u32 %s2794_s21, 1 }
  0x75   : > { %v2410_v1 = vld [vmem:[%s3097_s10 + $0x104] ss:$8 sps:$4 sm:$0xff]   ;;  %1185 = vmatprep.subr.bf16.mxu1 %v2408_v0  ;;  %v2413_v3 = vld [vmem:[%s3097_s10 + $0x100] ss:$8 sps:$4 sm:$0xff]   ;;  %v2414_v4 = vld [vmem:[%s3097_s10 + $0x14] ss:$8 sps:$4 sm:$0xff]  }
  0x76   : > { %1378 = vmatprep.subr.bf16.mxu0 %v2410_v1  ;;  %1186 = vmatpush1.bf16.msra.mxu1 %v2412_v2  ;;  %v2416_v5 = vld [vmem:[%s3097_s10 + $0x114] ss:$8 sps:$4 sm:$0xff]   ;;  %v2418_v6 = vld [vmem:[%s3097_s10 + $0x10] ss:$8 sps:$4 sm:$0xff]   ;;  %v2420_v8 = vld [vmem:[%s3097_s10 + $0x24] ss:$8 sps:$4 sm:$0xff]  }
  0x77   : > { %1379 = vmatpush1.bf16.msra.mxu0 %v2413_v3  ;;  %1187 = vmatprep.subr.bf16.mxu1 %v2414_v4  ;;  %v2419_v7 = vld [vmem:[%s3097_s10 + $0x110] ss:$8 sps:$4 sm:$0xff]   ;;  %v2422_v9 = vld [vmem:[%s3097_s10 + $0x124] ss:$8 sps:$4 sm:$0xff]   ;;  %v2424_v10 = vld [vmem:[%s3097_s10 + $0x20] ss:$8 sps:$4 sm:$0xff]  }
  0x78   : > { %1380 = vmatprep.subr.bf16.mxu0 %v2416_v5  ;;  %v2425_v11 = vld [vmem:[%s3097_s10 + $0x120] ss:$8 sps:$4 sm:$0xff]   ;;  %v2426_v12 = vld [vmem:[%s3097_s10 + $0x34] ss:$8 sps:$4 sm:$0xff]   ;;  %v2430_v14 = vld [vmem:[%s3097_s10 + $0x30] ss:$8 sps:$4 sm:$0xff]  }
  0x79   : > { %v2428_v13 = vld [vmem:[%s3097_s10 + $0x134] ss:$8 sps:$4 sm:$0xff]   ;;  %v2431_v15 = vld [vmem:[%s3097_s10 + $0x130] ss:$8 sps:$4 sm:$0xff]   ;;  %v2432_v16 = vld [vmem:[%s3097_s10 + $0x44] ss:$8 sps:$4 sm:$0xff]  }
  0x7a   : > { %1188 = vmatpush1.bf16.msra.mxu1 %v2418_v6  ;;  %v2434_v17 = vld [vmem:[%s3097_s10 + $0x144] ss:$8 sps:$4 sm:$0xff]   ;;  %v2436_v18 = vld [vmem:[%s3097_s10 + $0x40] ss:$8 sps:$4 sm:$0xff]   ;;  %v2438_v20 = vld [vmem:[%s3097_s10 + $0x54] ss:$8 sps:$4 sm:$0xff]  }
  0x7b   : > { %1381 = vmatpush1.bf16.msra.mxu0 %v2419_v7  ;;  %1189 = vmatprep.subr.bf16.mxu1 %v2420_v8  ;;  %v2437_v19 = vld [vmem:[%s3097_s10 + $0x140] ss:$8 sps:$4 sm:$0xff]   ;;  %v2440_v21 = vld [vmem:[%s3097_s10 + $0x154] ss:$8 sps:$4 sm:$0xff]   ;;  %v2442_v22 = vld [vmem:[%s3097_s10 + $0x50] ss:$8 sps:$4 sm:$0xff]  }
  0x7c   : > { %1382 = vmatprep.subr.bf16.mxu0 %v2422_v9  ;;  %v2443_v23 = vld [vmem:[%s3097_s10 + $0x150] ss:$8 sps:$4 sm:$0xff]   ;;  %v2444_v24 = vld [vmem:[%s3097_s10 + $0x64] ss:$8 sps:$4 sm:$0xff]   ;;  %v2448_v26 = vld [vmem:[%s3097_s10 + $0x60] ss:$8 sps:$4 sm:$0xff]  }
  0x7d   : > { %v2446_v25 = vld [vmem:[%s3097_s10 + $0x164] ss:$8 sps:$4 sm:$0xff]   ;;  %v2449_v27 = vld [vmem:[%s3097_s10 + $0x160] ss:$8 sps:$4 sm:$0xff]   ;;  %v2450_v28 = vld [vmem:[%s3097_s10 + $0x74] ss:$8 sps:$4 sm:$0xff]  }
  0x7e   : > { %1190 = vmatpush1.bf16.msra.mxu1 %v2424_v10  ;;  %v2452_v29 = vld [vmem:[%s3097_s10 + $0x174] ss:$8 sps:$4 sm:$0xff]   ;;  %v2454_v30 = vld [vmem:[%s3097_s10 + $0x70] ss:$8 sps:$4 sm:$0xff]   ;;  %v2456_v32 = vld [vmem:[%s3097_s10 + $0x84] ss:$8 sps:$4 sm:$0xff]  }
  0x7f   : > { %1383 = vmatpush1.bf16.msra.mxu0 %v2425_v11  ;;  %1191 = vmatprep.subr.bf16.mxu1 %v2426_v12  ;;  %v2455_v31 = vld [vmem:[%s3097_s10 + $0x170] ss:$8 sps:$4 sm:$0xff]   ;;  %v2458_v33 = vld [vmem:[%s3097_s10 + $0x184] ss:$8 sps:$4 sm:$0xff]   ;;  %v2460_v34 = vld [vmem:[%s3097_s10 + $0x80] ss:$8 sps:$4 sm:$0xff]  }
  0x80   : > { %1384 = vmatprep.subr.bf16.mxu0 %v2428_v13  ;;  %v2461_v35 = vld [vmem:[%s3097_s10 + $0x180] ss:$8 sps:$4 sm:$0xff]   ;;  %v2462_v36 = vld [vmem:[%s3097_s10 + $0x94] ss:$8 sps:$4 sm:$0xff]   ;;  %v2466_v38 = vld [vmem:[%s3097_s10 + $0x90] ss:$8 sps:$4 sm:$0xff]  }
  0x81   : > { %v2464_v37 = vld [vmem:[%s3097_s10 + $0x194] ss:$8 sps:$4 sm:$0xff]   ;;  %v2467_v39 = vld [vmem:[%s3097_s10 + $0x190] ss:$8 sps:$4 sm:$0xff]   ;;  %v2468_v40 = vld [vmem:[%s3097_s10 + $0xa4] ss:$8 sps:$4 sm:$0xff]  }
  0x82   : > { %1192 = vmatpush1.bf16.msra.mxu1 %v2430_v14  ;;  %v2470_v41 = vld [vmem:[%s3097_s10 + $0x1a4] ss:$8 sps:$4 sm:$0xff]   ;;  %v2472_v42 = vld [vmem:[%s3097_s10 + $0xa0] ss:$8 sps:$4 sm:$0xff]   ;;  %v2474_v44 = vld [vmem:[%s3097_s10 + $0xb4] ss:$8 sps:$4 sm:$0xff]  }
  0x83   : > { %1385 = vmatpush1.bf16.msra.mxu0 %v2431_v15  ;;  %1193 = vmatprep.subr.bf16.mxu1 %v2432_v16  ;;  %v2473_v43 = vld [vmem:[%s3097_s10 + $0x1a0] ss:$8 sps:$4 sm:$0xff]   ;;  %v2476_v45 = vld [vmem:[%s3097_s10 + $0x1b4] ss:$8 sps:$4 sm:$0xff]   ;;  %v2478_v46 = vld [vmem:[%s3097_s10 + $0xb0] ss:$8 sps:$4 sm:$0xff]  }
  0x84   : > { %1386 = vmatprep.subr.bf16.mxu0 %v2434_v17  ;;  %v2479_v47 = vld [vmem:[%s3097_s10 + $0x1b0] ss:$8 sps:$4 sm:$0xff]   ;;  %v2480_v48 = vld [vmem:[%s3097_s10 + $0xc4] ss:$8 sps:$4 sm:$0xff]   ;;  %v2484_v52 = vld [vmem:[%s3097_s10 + $0xc0] ss:$8 sps:$4 sm:$0xff]  }
  0x85   : > { %v2506_v49 = vld [vmem:[%s3090_s27 + $0x4] ss:$16 sps:$4 sm:$0xff]   ;;  %v2509_v51 = vld [vmem:[%s3090_s27 + $0xc] ss:$16 sps:$4 sm:$0xff]   ;;  %v2485_v53 = vld [vmem:[%s3097_s10 + $0x1c0] ss:$8 sps:$4 sm:$0xff]  }
  0x86   : > { %1194 = vmatpush1.bf16.msra.mxu1 %v2436_v18  ;;  %v2482_v50 = vld [vmem:[%s3097_s10 + $0x1c4] ss:$8 sps:$4 sm:$0xff]   ;;  %1217 = vmatprep.mubr.bf16.mxu1 %v2506_v49  ;;  %v2486_v54 = vld [vmem:[%s3097_s10 + $0xd4] ss:$8 sps:$4 sm:$0xff]   ;;  %v2490_v56 = vld [vmem:[%s3097_s10 + $0xd0] ss:$8 sps:$4 sm:$0xff]  }
  0x87   : > { %1387 = vmatpush1.bf16.msra.mxu0 %v2437_v19  ;;  %1195 = vmatprep.subr.bf16.mxu1 %v2438_v20  ;;  %v2488_v55 = vld [vmem:[%s3097_s10 + $0x1d4] ss:$8 sps:$4 sm:$0xff]   ;;  %v2491_v57 = vld [vmem:[%s3097_s10 + $0x1d0] ss:$8 sps:$4 sm:$0xff]   ;;  %v2492_v58 = vld [vmem:[%s3097_s10 + $0xe4] ss:$8 sps:$4 sm:$0xff]  }
  0x88   : > { %1388 = vmatprep.subr.bf16.mxu0 %v2440_v21  ;;  %1410 = vmatprep.mubr.bf16.mxu0 %v2509_v51  ;;  %v2494_v59 = vld [vmem:[%s3097_s10 + $0x1e4] ss:$8 sps:$4 sm:$0xff]   ;;  %v2496_v60 = vld [vmem:[%s3097_s10 + $0xe0] ss:$8 sps:$4 sm:$0xff]   ;;  %v2498_v62 = vld [vmem:[%s3097_s10 + $0xf4] ss:$8 sps:$4 sm:$0xff]  }
  0x89   : > { %v2497_v61 = vld [vmem:[%s3097_s10 + $0x1e0] ss:$8 sps:$4 sm:$0xff]   ;;  %v2500_v63 = vld [vmem:[%s3097_s10 + $0x1f4] ss:$8 sps:$4 sm:$0xff]   ;;  %v2502_v0 = vld [vmem:[%s3097_s10 + $0xf0] ss:$8 sps:$4 sm:$0xff]  }
  0x8a   : > { %1196 = vmatpush1.bf16.msra.mxu1 %v2442_v22  ;;  %v2503_v1 = vld [vmem:[%s3097_s10 + $0x1f0] ss:$8 sps:$4 sm:$0xff]   ;;  %v2510_v4 = vld [vmem:[%s3090_s27 + $0x24] ss:$16 sps:$4 sm:$0xff]   ;;  %v2512_v5 = vld [vmem:[%s3090_s27 + $0x2c] ss:$16 sps:$4 sm:$0xff]  }
  0x8b   : > { %1389 = vmatpush1.bf16.msra.mxu0 %v2443_v23  ;;  %1197 = vmatprep.subr.bf16.mxu1 %v2444_v24  ;;  %v2504_v2 = vld [vmem:[%s3090_s27] ss:$16 sps:$4 sm:$0xff]   ;;  %v2507_v3 = vld [vmem:[%s3090_s27 + $0x8] ss:$16 sps:$4 sm:$0xff]   ;;  %v2516_v8 = vld [vmem:[%s3090_s27 + $0x44] ss:$16 sps:$4 sm:$0xff]  }
  0x8c   : > { %1390 = vmatprep.subr.bf16.mxu0 %v2446_v25  ;;  %v2514_v6 = vld [vmem:[%s3090_s27 + $0x20] ss:$16 sps:$4 sm:$0xff]   ;;  %v2515_v7 = vld [vmem:[%s3090_s27 + $0x28] ss:$16 sps:$4 sm:$0xff]   ;;  %v2518_v9 = vld [vmem:[%s3090_s27 + $0x4c] ss:$16 sps:$4 sm:$0xff]  }
  0x8d   : > { %v2520_v10 = vld [vmem:[%s3090_s27 + $0x40] ss:$16 sps:$4 sm:$0xff]   ;;  %v2521_v11 = vld [vmem:[%s3090_s27 + $0x48] ss:$16 sps:$4 sm:$0xff]   ;;  %v2522_v12 = vld [vmem:[%s3090_s27 + $0x64] ss:$16 sps:$4 sm:$0xff]  }
  0x8e   : > { %1198 = vmatpush1.bf16.msra.mxu1 %v2448_v26  ;;  %v2524_v13 = vld [vmem:[%s3090_s27 + $0x6c] ss:$16 sps:$4 sm:$0xff]   ;;  %v2526_v14 = vld [vmem:[%s3090_s27 + $0x60] ss:$16 sps:$4 sm:$0xff]   ;;  %v2527_v15 = vld [vmem:[%s3090_s27 + $0x68] ss:$16 sps:$4 sm:$0xff]  }
  0x8f   : > { %1391 = vmatpush1.bf16.msra.mxu0 %v2449_v27  ;;  %1199 = vmatprep.subr.bf16.mxu1 %v2450_v28  ;;  %v2528_v16 = vld [vmem:[%s3090_s27 + $0x84] ss:$16 sps:$4 sm:$0xff]   ;;  %v2530_v17 = vld [vmem:[%s3090_s27 + $0x8c] ss:$16 sps:$4 sm:$0xff]   ;;  %v2532_v18 = vld [vmem:[%s3090_s27 + $0x80] ss:$16 sps:$4 sm:$0xff]  }
  0x90   : > { %1392 = vmatprep.subr.bf16.mxu0 %v2452_v29  ;;  %v2533_v19 = vld [vmem:[%s3090_s27 + $0x88] ss:$16 sps:$4 sm:$0xff]   ;;  %v2534_v20 = vld [vmem:[%s3090_s27 + $0xa4] ss:$16 sps:$4 sm:$0xff]   ;;  %v2536_v21 = vld [vmem:[%s3090_s27 + $0xac] ss:$16 sps:$4 sm:$0xff]  }
  0x91   : > { %v2538_v22 = vld [vmem:[%s3090_s27 + $0xa0] ss:$16 sps:$4 sm:$0xff]   ;;  %v2539_v23 = vld [vmem:[%s3090_s27 + $0xa8] ss:$16 sps:$4 sm:$0xff]   ;;  %v2540_v24 = vld [vmem:[%s3090_s27 + $0xc4] ss:$16 sps:$4 sm:$0xff]  }
  0x92   : > { %1200 = vmatpush1.bf16.msra.mxu1 %v2454_v30  ;;  %v2542_v25 = vld [vmem:[%s3090_s27 + $0xcc] ss:$16 sps:$4 sm:$0xff]   ;;  %v2544_v26 = vld [vmem:[%s3090_s27 + $0xc0] ss:$16 sps:$4 sm:$0xff]   ;;  %v2545_v27 = vld [vmem:[%s3090_s27 + $0xc8] ss:$16 sps:$4 sm:$0xff]  }
  0x93   : > { %1393 = vmatpush1.bf16.msra.mxu0 %v2455_v31  ;;  %1201 = vmatprep.subr.bf16.mxu1 %v2456_v32  ;;  %v2546_v28 = vld [vmem:[%s3090_s27 + $0xe4] ss:$16 sps:$4 sm:$0xff]   ;;  %v2548_v29 = vld [vmem:[%s3090_s27 + $0xec] ss:$16 sps:$4 sm:$0xff]   ;;  %v2550_v30 = vld [vmem:[%s3090_s27 + $0xe0] ss:$16 sps:$4 sm:$0xff]  }
  0x94   : > { %1394 = vmatprep.subr.bf16.mxu0 %v2458_v33  ;;  %v2551_v31 = vld [vmem:[%s3090_s27 + $0xe8] ss:$16 sps:$4 sm:$0xff]   ;;  %v2552_v32 = vld [vmem:[%s3090_s27 + $0x104] ss:$16 sps:$4 sm:$0xff]   ;;  %v2554_v33 = vld [vmem:[%s3090_s27 + $0x10c] ss:$16 sps:$4 sm:$0xff]  }
  0x95   : > { %v2578_v49 = vld [vmem:[%s3090_s27 + $0x18c] ss:$16 sps:$4 sm:$0xff]   ;;  %v2581_v51 = vld [vmem:[%s3090_s27 + $0x188] ss:$16 sps:$4 sm:$0xff]   ;;  %p279_p1 = scmp.lt.s32.totalorder %s3232_s4, 3  ;;  %s3508_s29 = sld [smem:[#allocation19_spill]] }
  0x96   : > { %1202 = vmatpush1.bf16.msra.mxu1 %v2460_v34  ;;  %v2556_v34 = vld [vmem:[%s3090_s27 + $0x100] ss:$16 sps:$4 sm:$0xff]   ;;  %s271_s5 = sand.u32 1, %s2762_s13   ;;  %s3509_s22 = sld [smem:[#allocation12_spill]] }
  0x97   : > { %1395 = vmatpush1.bf16.msra.mxu0 %v2461_v35  ;;  %1203 = vmatprep.subr.bf16.mxu1 %v2462_v36  ;;  %v2557_v35 = vld [vmem:[%s3090_s27 + $0x108] ss:$16 sps:$4 sm:$0xff]   ;;  %v2558_v36 = vld [vmem:[%s3090_s27 + $0x124] ss:$16 sps:$4 sm:$0xff]   ;;  %s280_s11 = scalar_select %p279_p1, %s3232_s4, 3 }
  0x98   : > { %1396 = vmatprep.subr.bf16.mxu0 %v2464_v37  ;;  %v2560_v37 = vld [vmem:[%s3090_s27 + $0x12c] ss:$16 sps:$4 sm:$0xff]   ;;  %s2065_s2 = sshll.u32 %s271_s5, 9  ;;  %s3510_s0 = sld [smem:[#allocation17_spill]] }
  0x99   : > { %s3248_s21 = scalar_lea.vmem [#allocation8], %s2065_s2  ;;  %s3511_s10 = sld [smem:[#allocation20_spill]] }
  0x9a   : > { %1204 = vmatpush1.bf16.msra.mxu1 %v2466_v38  ;;  %v2562_v38 = vld [vmem:[%s3090_s27 + $0x120] ss:$16 sps:$4 sm:$0xff]   ;;  %s2818_s24 = smov [#allocation8]  }
  0x9b   : > { %1397 = vmatpush1.bf16.msra.mxu0 %v2467_v39  ;;  %1205 = vmatprep.subr.bf16.mxu1 %v2468_v40  ;;  %v2563_v39 = vld [vmem:[%s3090_s27 + $0x128] ss:$16 sps:$4 sm:$0xff]   ;;  %v2564_v40 = vld [vmem:[%s3090_s27 + $0x144] ss:$16 sps:$4 sm:$0xff]   ;;  %s281_s7 = scalar_lea.vmem %s3508_s29, %s280_s11  ;;  %s3388_s11 = scalar_lea.sflag [#allocation5], %s271_s5 }
  0x9c   : > { %1398 = vmatprep.subr.bf16.mxu0 %v2470_v41  ;;  %v2566_v41 = vld [vmem:[%s3090_s27 + $0x14c] ss:$16 sps:$4 sm:$0xff]   ;;  %s2205_s26 = sshll.u32 %s3509_s22, 7  ;;  %s2664_s29 = sshll.u32 %s2818_s24, 4  ;;  %s2665_s29 = int_to_ptr.vmem [resolvable:$false] %s2664_s29 }
  0x9d   : > { %s1920_s28 = sadd.s32 %s2205_s26, %s3232_s4 }
  0x9e   : > { %1206 = vmatpush1.bf16.msra.mxu1 %v2472_v42  ;;  %v2568_v42 = vld [vmem:[%s3090_s27 + $0x140] ss:$16 sps:$4 sm:$0xff]   ;;  %s2199_s18 = sshll.u32 %s1920_s28, 7  ;;  %p3512_p9 = scmp.ne.s32.totalorder %s3510_s0, 0 }
  0x9f   : > { %1399 = vmatpush1.bf16.msra.mxu0 %v2473_v43  ;;  %1207 = vmatprep.subr.bf16.mxu1 %v2474_v44  ;;  %v2569_v43 = vld [vmem:[%s3090_s27 + $0x148] ss:$16 sps:$4 sm:$0xff]   ;;  %v2570_v44 = vld [vmem:[%s3090_s27 + $0x164] ss:$16 sps:$4 sm:$0xff]   ;;  %s3376_s4 = scalar_lea.hbm %s3511_s10, %s2199_s18 }
  0xa0   : > { %1400 = vmatprep.subr.bf16.mxu0 %v2476_v45  ;;  %v2572_v45 = vld [vmem:[%s3090_s27 + $0x16c] ss:$16 sps:$4 sm:$0xff]  }
  0xa2   : > { %1208 = vmatpush1.bf16.msra.mxu1 %v2478_v46  ;;  %v2574_v46 = vld [vmem:[%s3090_s27 + $0x160] ss:$16 sps:$4 sm:$0xff]  }
  0xa3   : > { %1401 = vmatpush1.bf16.msra.mxu0 %v2479_v47  ;;  %1209 = vmatprep.subr.bf16.mxu1 %v2480_v48  ;;  %v2575_v47 = vld [vmem:[%s3090_s27 + $0x168] ss:$16 sps:$4 sm:$0xff]   ;;  %v2576_v48 = vld [vmem:[%s3090_s27 + $0x184] ss:$16 sps:$4 sm:$0xff]  }
  0xa4   : > { %1402 = vmatprep.subr.bf16.mxu0 %v2482_v50  ;;  %v2580_v50 = vld [vmem:[%s3090_s27 + $0x180] ss:$16 sps:$4 sm:$0xff]  }
  0xa6   : > { %1210 = vmatpush1.bf16.msra.mxu1 %v2484_v52  ;;  %v2582_v52 = vld [vmem:[%s3090_s27 + $0x1a4] ss:$16 sps:$4 sm:$0xff]  }
  0xa7   : > { %1403 = vmatpush1.bf16.msra.mxu0 %v2485_v53  ;;  %1211 = vmatprep.subr.bf16.mxu1 %v2486_v54  ;;  %v2584_v53 = vld [vmem:[%s3090_s27 + $0x1ac] ss:$16 sps:$4 sm:$0xff]   ;;  %v2586_v54 = vld [vmem:[%s3090_s27 + $0x1a0] ss:$16 sps:$4 sm:$0xff]  }
  0xa8   : > { %1404 = vmatprep.subr.bf16.mxu0 %v2488_v55  ;;  %v2587_v55 = vld [vmem:[%s3090_s27 + $0x1a8] ss:$16 sps:$4 sm:$0xff]  }
  0xaa   : > { %1212 = vmatpush1.bf16.msra.mxu1 %v2490_v56  ;;  %v2588_v56 = vld [vmem:[%s3090_s27 + $0x1c4] ss:$16 sps:$4 sm:$0xff]  }
  0xab   : > { %1405 = vmatpush1.bf16.msra.mxu0 %v2491_v57  ;;  %1213 = vmatprep.subr.bf16.mxu1 %v2492_v58  ;;  %v2590_v57 = vld [vmem:[%s3090_s27 + $0x1cc] ss:$16 sps:$4 sm:$0xff]   ;;  %v2592_v58 = vld [vmem:[%s3090_s27 + $0x1c0] ss:$16 sps:$4 sm:$0xff]  }
  0xac   : > { %1406 = vmatprep.subr.bf16.mxu0 %v2494_v59  ;;  %v2593_v59 = vld [vmem:[%s3090_s27 + $0x1c8] ss:$16 sps:$4 sm:$0xff]  }
  0xae   : > { %1214 = vmatpush1.bf16.msra.mxu1 %v2496_v60  ;;  %v2594_v60 = vld [vmem:[%s3090_s27 + $0x1e4] ss:$16 sps:$4 sm:$0xff]  }
  0xaf   : > { %1407 = vmatpush1.bf16.msra.mxu0 %v2497_v61  ;;  %1215 = vmatprep.subr.bf16.mxu1 %v2498_v62  ;;  %v2596_v61 = vld [vmem:[%s3090_s27 + $0x1ec] ss:$16 sps:$4 sm:$0xff]   ;;  %v2598_v62 = vld [vmem:[%s3090_s27 + $0x1e0] ss:$16 sps:$4 sm:$0xff]  }
  0xb0   : > { %1408 = vmatprep.subr.bf16.mxu0 %v2500_v63  ;;  %v2599_v63 = vld [vmem:[%s3090_s27 + $0x1e8] ss:$16 sps:$4 sm:$0xff]   ;;  %s1923_s27 = sshll.u32 %s3248_s21, 4  ;;  %s3380_s27 = int_to_ptr.vmem [resolvable:$true] %s1923_s27 }
  0xb1   : > { %s2660_s15 = scalar_lea.vmem %s3380_s27, 8192  ;;  %p2667_p10 = scmp.lt.s32.totalorder %s3380_s27, %s2665_s29 }
  0xb2   : > { %1216 = vmatpush1.bf16.msra.mxu1 %v2502_v0  ;;  %v1768_v0 = vlaneseq  ;;  %p2661_p12 = scmp.ne.s32.totalorder %s3380_s27, %s2660_s15 }
  0xb3   : > { %1409 = vmatpush1.bf16.msra.mxu0 %v2503_v1 }
  0xb4   : > { %v1769_v1 = vshrl.u32 %v1768_v0, 7  ;;  %p2662_p0 = pnand %p2661_p12, %p3512_p9 }
  0xb5   : > { %1218 = vmatmul.mubr.bf16.vlgmr.msra.gmra.mrb[0].mxu1 %v2504_v2 }
  0xb6   : > { %1411 = vmatmul.mubr.bf16.vlgmr.msra.gmra.mrb[0].mxu0 %v2507_v3  ;;  %1227 = vmatprep.mubr.bf16.mxu1 %v2510_v4  ;;  %v1770_v2 = vsub.s32 0, %v1769_v1  ;;  %v1766_v3 = vld [vmem:[%s281_s7] sm:$0x3]  ;;  %v1774_v4 = vsub.s32 1, %v1769_v1  ;;  %p2663_p4 = pneg %p2662_p0  ;;  %s2666_s7 = scalar_lea.vmem %s2665_s29, 16384 }
  0xb7   : > { %1420 = vmatprep.mubr.bf16.mxu0 %v2512_v5  ;;  %p2668_p8 = scmp.lt.s32.totalorder %s2666_s7, %s2660_s15 }
  0xb8   : > { %v3242_v5 = vrot.slane %v1766_v3, %v1770_v2 }
  0xb9   : > { %p2669_p11 = por %p2668_p8, %p2667_p10 }
  0xbb   : > { %p2670_p2 = pnand %p2669_p11, %p2663_p4 }
  0xbd   : > { %1228 = vmatmul.mubr.bf16.gmra.mrb[4].mxu1 %v2514_v6 }
  0xbe   : > { %1421 = vmatmul.mubr.bf16.gmra.mrb[4].mxu0 %v2515_v7  ;;  %1237 = vmatprep.mubr.bf16.mxu1 %v2516_v8  ;;  %v3244_v8 = vrot.slane %v1766_v3, %v1774_v4 }
  0xbf   : > { %1430 = vmatprep.mubr.bf16.mxu0 %v2518_v9 }
  0xc5   : > { %1238 = vmatmul.mubr.bf16.gmra.mrb[8].mxu1 %v2520_v10 }
  0xc6   : > { %1431 = vmatmul.mubr.bf16.gmra.mrb[8].mxu0 %v2521_v11  ;;  %1247 = vmatprep.mubr.bf16.mxu1 %v2522_v12 }
  0xc7   : > { %1440 = vmatprep.mubr.bf16.mxu0 %v2524_v13 }
  0xcd   : > { %1248 = vmatmul.mubr.bf16.gmra.mrb[12].mxu1 %v2526_v14 }
  0xce   : > { %1441 = vmatmul.mubr.bf16.gmra.mrb[12].mxu0 %v2527_v15  ;;  %1257 = vmatprep.mubr.bf16.mxu1 %v2528_v16 }
  0xcf   : > { %1450 = vmatprep.mubr.bf16.mxu0 %v2530_v17 }
  0xd5   : > { %1258 = vmatmul.mubr.bf16.gmra.mrb[16].mxu1 %v2532_v18 }
  0xd6   : > { %1451 = vmatmul.mubr.bf16.gmra.mrb[16].mxu0 %v2533_v19  ;;  %1267 = vmatprep.mubr.bf16.mxu1 %v2534_v20 }
  0xd7   : > { %1460 = vmatprep.mubr.bf16.mxu0 %v2536_v21 }
  0xdd   : > { %1268 = vmatmul.mubr.bf16.gmra.mrb[20].mxu1 %v2538_v22 }
  0xde   : > { %1461 = vmatmul.mubr.bf16.gmra.mrb[20].mxu0 %v2539_v23  ;;  %1277 = vmatprep.mubr.bf16.mxu1 %v2540_v24 }
  0xdf   : > { %1470 = vmatprep.mubr.bf16.mxu0 %v2542_v25 }
  0xe5   : > { %1278 = vmatmul.mubr.bf16.gmra.mrb[24].mxu1 %v2544_v26 }
  0xe6   : > { %1471 = vmatmul.mubr.bf16.gmra.mrb[24].mxu0 %v2545_v27  ;;  %1287 = vmatprep.mubr.bf16.mxu1 %v2546_v28 }
  0xe7   : > { %1480 = vmatprep.mubr.bf16.mxu0 %v2548_v29 }
  0xed   : > { %1288 = vmatmul.mubr.bf16.gmra.mrb[28].mxu1 %v2550_v30 }
  0xee   : > { %1481 = vmatmul.mubr.bf16.gmra.mrb[28].mxu0 %v2551_v31  ;;  %1297 = vmatprep.mubr.bf16.mxu1 %v2552_v32 }
  0xef   : > { %1490 = vmatprep.mubr.bf16.mxu0 %v2554_v33 }
  0xf5   : > { %1298 = vmatmul.mubr.bf16.gmra.mrb[32].mxu1 %v2556_v34 }
  0xf6   : > { %1491 = vmatmul.mubr.bf16.gmra.mrb[32].mxu0 %v2557_v35  ;;  %1307 = vmatprep.mubr.bf16.mxu1 %v2558_v36 }
  0xf7   : > { %1500 = vmatprep.mubr.bf16.mxu0 %v2560_v37 }
  0xfd   : > { %1308 = vmatmul.mubr.bf16.gmra.mrb[36].mxu1 %v2562_v38 }
  0xfe   : > { %1501 = vmatmul.mubr.bf16.gmra.mrb[36].mxu0 %v2563_v39  ;;  %1317 = vmatprep.mubr.bf16.mxu1 %v2564_v40 }
  0xff   : > { %1510 = vmatprep.mubr.bf16.mxu0 %v2566_v41 }
 0x105   : > { %1318 = vmatmul.mubr.bf16.gmra.mrb[40].mxu1 %v2568_v42 }
 0x106   : > { %1511 = vmatmul.mubr.bf16.gmra.mrb[40].mxu0 %v2569_v43  ;;  %1327 = vmatprep.mubr.bf16.mxu1 %v2570_v44 }
 0x107   : > { %1520 = vmatprep.mubr.bf16.mxu0 %v2572_v45 }
 0x10d   : > { %1328 = vmatmul.mubr.bf16.gmra.mrb[44].mxu1 %v2574_v46 }
 0x10e   : > { %1521 = vmatmul.mubr.bf16.gmra.mrb[44].mxu0 %v2575_v47  ;;  %1337 = vmatprep.mubr.bf16.mxu1 %v2576_v48 }
 0x10f   : > { %1530 = vmatprep.mubr.bf16.mxu0 %v2578_v49 }
 0x115   : > { %1338 = vmatmul.mubr.bf16.gmra.mrb[48].mxu1 %v2580_v50 }
 0x116   : > { %1531 = vmatmul.mubr.bf16.gmra.mrb[48].mxu0 %v2581_v51  ;;  %1347 = vmatprep.mubr.bf16.mxu1 %v2582_v52 }
 0x117   : > { %1540 = vmatprep.mubr.bf16.mxu0 %v2584_v53 }
 0x11d   : > { %1348 = vmatmul.mubr.bf16.gmra.mrb[52].mxu1 %v2586_v54 }
 0x11e   : > { %1541 = vmatmul.mubr.bf16.gmra.mrb[52].mxu0 %v2587_v55  ;;  %1357 = vmatprep.mubr.bf16.mxu1 %v2588_v56 }
 0x11f   : > { %1550 = vmatprep.mubr.bf16.mxu0 %v2590_v57 }
 0x125   : > { %1358 = vmatmul.mubr.bf16.gmra.mrb[56].mxu1 %v2592_v58 }
 0x126   : > { %1551 = vmatmul.mubr.bf16.gmra.mrb[56].mxu0 %v2593_v59  ;;  %1367 = vmatprep.mubr.bf16.mxu1 %v2594_v60 }
 0x127   : > { %1560 = vmatprep.mubr.bf16.mxu0 %v2596_v61 }
 0x12d   : > { %1368 = vmatmul.mubr.bf16.gmra.mrb[60].mxu1 %v2598_v62 }
 0x12e   : > { %1561 = vmatmul.mubr.bf16.gmra.mrb[60].mxu0 %v2599_v63 }
 0x188   : > { %v1219_v6 = vpop.f32.mrb[0].mxu1 }
 0x189   : > { %v1412_v7 = vpop.f32.mrb[0].mxu0  ;;  %v1221_v10 = vpop.f32.mrb[1].mxu1 }
 0x18a   : > { %v1413_v9 = vadd.f32 %v1412_v7, %v1219_v6  ;;  %v1414_v11 = vpop.f32.mrb[1].mxu0  ;;  %v1223_v13 = vpop.f32.mrb[2].mxu1 }
 0x18b   : > { %v1415_v12 = vadd.f32 %v1414_v11, %v1221_v10  ;;  %v1416_v14 = vpop.f32.mrb[2].mxu0  ;;  %v1225_v17 = vpop.f32.mrb[3].mxu1 }
 0x18c   : > { %v1778_v15 = vadd.f32 %v3242_v5, %v1413_v9  ;;  %v1417_v16 = vadd.f32 %v1416_v14, %v1223_v13  ;;  %v1418_v18 = vpop.f32.mrb[3].mxu0 }
 0x18d   : > { %v1779_v19 = vadd.f32 %v3244_v8, %v1415_v12  ;;  %v1419_v20 = vadd.f32 %v1418_v18, %v1225_v17 }
 0x18e   : > { %1842 = vst [vmem:[%s3248_s21] sm:$0xff] %v1778_v15  ;;  %v1780_v21 = vadd.f32 %v3242_v5, %v1417_v16 }
 0x18f   : > { %1843 = vst [vmem:[%s3248_s21 + $0x8] sm:$0xff] %v1779_v19  ;;  %v1781_v22 = vadd.f32 %v3244_v8, %v1419_v20 }
 0x190   : > { %1844 = vst [vmem:[%s3248_s21 + $0x10] sm:$0xff] %v1780_v21  ;;  %v1229_v23 = vpop.f32.mrb[4].mxu1 }
 0x191   : > { %1845 = vst [vmem:[%s3248_s21 + $0x18] sm:$0xff] %v1781_v22  ;;  %v1422_v24 = vpop.f32.mrb[4].mxu0  ;;  %v1231_v26 = vpop.f32.mrb[5].mxu1 }
 0x192   : > { %v1423_v25 = vadd.f32 %v1422_v24, %v1229_v23  ;;  %v1424_v27 = vpop.f32.mrb[5].mxu0  ;;  %v1233_v29 = vpop.f32.mrb[6].mxu1 }
 0x193   : > { %v1425_v28 = vadd.f32 %v1424_v27, %v1231_v26  ;;  %v1426_v30 = vpop.f32.mrb[6].mxu0  ;;  %v1235_v33 = vpop.f32.mrb[7].mxu1 }
 0x194   : > { %v1782_v31 = vadd.f32 %v3242_v5, %v1423_v25  ;;  %v1427_v32 = vadd.f32 %v1426_v30, %v1233_v29  ;;  %v1428_v34 = vpop.f32.mrb[7].mxu0 }
 0x195   : > { %v1783_v35 = vadd.f32 %v3244_v8, %v1425_v28  ;;  %v1429_v36 = vadd.f32 %v1428_v34, %v1235_v33 }
 0x196   : > { %1846 = vst [vmem:[%s3248_s21 + $0x20] sm:$0xff] %v1782_v31  ;;  %v1784_v37 = vadd.f32 %v3242_v5, %v1427_v32 }
 0x197   : > { %1847 = vst [vmem:[%s3248_s21 + $0x28] sm:$0xff] %v1783_v35  ;;  %v1785_v38 = vadd.f32 %v3244_v8, %v1429_v36 }
 0x198   : > { %1848 = vst [vmem:[%s3248_s21 + $0x30] sm:$0xff] %v1784_v37  ;;  %v1239_v39 = vpop.f32.mrb[8].mxu1 }
 0x199   : > { %1849 = vst [vmem:[%s3248_s21 + $0x38] sm:$0xff] %v1785_v38  ;;  %v1432_v40 = vpop.f32.mrb[8].mxu0  ;;  %v1241_v42 = vpop.f32.mrb[9].mxu1 }
 0x19a   : > { %v1433_v41 = vadd.f32 %v1432_v40, %v1239_v39  ;;  %v1434_v43 = vpop.f32.mrb[9].mxu0  ;;  %v1243_v45 = vpop.f32.mrb[10].mxu1 }
 0x19b   : > { %v1435_v44 = vadd.f32 %v1434_v43, %v1241_v42  ;;  %v1436_v46 = vpop.f32.mrb[10].mxu0  ;;  %v1245_v49 = vpop.f32.mrb[11].mxu1 }
 0x19c   : > { %v1786_v47 = vadd.f32 %v3242_v5, %v1433_v41  ;;  %v1437_v48 = vadd.f32 %v1436_v46, %v1243_v45  ;;  %v1438_v50 = vpop.f32.mrb[11].mxu0 }
 0x19d   : > { %v1787_v51 = vadd.f32 %v3244_v8, %v1435_v44  ;;  %v1439_v52 = vadd.f32 %v1438_v50, %v1245_v49 }
 0x19e   : > { %1850 = vst [vmem:[%s3248_s21 + $0x40] sm:$0xff] %v1786_v47  ;;  %v1788_v53 = vadd.f32 %v3242_v5, %v1437_v48 }
 0x19f   : > { %1851 = vst [vmem:[%s3248_s21 + $0x48] sm:$0xff] %v1787_v51  ;;  %v1789_v54 = vadd.f32 %v3244_v8, %v1439_v52 }
 0x1a0   : > { %1852 = vst [vmem:[%s3248_s21 + $0x50] sm:$0xff] %v1788_v53  ;;  %v1249_v55 = vpop.f32.mrb[12].mxu1 }
 0x1a1   : > { %1853 = vst [vmem:[%s3248_s21 + $0x58] sm:$0xff] %v1789_v54  ;;  %v1442_v56 = vpop.f32.mrb[12].mxu0  ;;  %v1251_v58 = vpop.f32.mrb[13].mxu1 }
 0x1a2   : > { %v1443_v57 = vadd.f32 %v1442_v56, %v1249_v55  ;;  %v1444_v59 = vpop.f32.mrb[13].mxu0  ;;  %v1253_v61 = vpop.f32.mrb[14].mxu1 }
 0x1a3   : > { %v1445_v60 = vadd.f32 %v1444_v59, %v1251_v58  ;;  %v1446_v62 = vpop.f32.mrb[14].mxu0  ;;  %v1255_v1 = vpop.f32.mrb[15].mxu1 }
 0x1a4   : > { %v1790_v63 = vadd.f32 %v3242_v5, %v1443_v57  ;;  %v1447_v0 = vadd.f32 %v1446_v62, %v1253_v61  ;;  %v1448_v2 = vpop.f32.mrb[15].mxu0 }
 0x1a5   : > { %v1791_v3 = vadd.f32 %v3244_v8, %v1445_v60  ;;  %v1449_v4 = vadd.f32 %v1448_v2, %v1255_v1 }
 0x1a6   : > { %1854 = vst [vmem:[%s3248_s21 + $0x60] sm:$0xff] %v1790_v63  ;;  %v1792_v6 = vadd.f32 %v3242_v5, %v1447_v0 }
 0x1a7   : > { %1855 = vst [vmem:[%s3248_s21 + $0x68] sm:$0xff] %v1791_v3  ;;  %v1793_v7 = vadd.f32 %v3244_v8, %v1449_v4 }
 0x1a8   : > { %1856 = vst [vmem:[%s3248_s21 + $0x70] sm:$0xff] %v1792_v6  ;;  %v1259_v9 = vpop.f32.mrb[16].mxu1 }
 0x1a9   : > { %1857 = vst [vmem:[%s3248_s21 + $0x78] sm:$0xff] %v1793_v7  ;;  %v1452_v10 = vpop.f32.mrb[16].mxu0  ;;  %v1261_v12 = vpop.f32.mrb[17].mxu1 }
 0x1aa   : > { %v1453_v11 = vadd.f32 %v1452_v10, %v1259_v9  ;;  %v1454_v13 = vpop.f32.mrb[17].mxu0  ;;  %v1263_v15 = vpop.f32.mrb[18].mxu1 }
 0x1ab   : > { %v1455_v14 = vadd.f32 %v1454_v13, %v1261_v12  ;;  %v1456_v16 = vpop.f32.mrb[18].mxu0  ;;  %v1265_v19 = vpop.f32.mrb[19].mxu1 }
 0x1ac   : > { %v1794_v17 = vadd.f32 %v3242_v5, %v1453_v11  ;;  %v1457_v18 = vadd.f32 %v1456_v16, %v1263_v15  ;;  %v1458_v20 = vpop.f32.mrb[19].mxu0 }
 0x1ad   : > { %v1795_v21 = vadd.f32 %v3244_v8, %v1455_v14  ;;  %v1459_v22 = vadd.f32 %v1458_v20, %v1265_v19 }
 0x1ae   : > { %1858 = vst [vmem:[%s3248_s21 + $0x80] sm:$0xff] %v1794_v17  ;;  %v1796_v23 = vadd.f32 %v3242_v5, %v1457_v18 }
 0x1af   : > { %1859 = vst [vmem:[%s3248_s21 + $0x88] sm:$0xff] %v1795_v21  ;;  %v1797_v24 = vadd.f32 %v3244_v8, %v1459_v22 }
 0x1b0   : > { %1860 = vst [vmem:[%s3248_s21 + $0x90] sm:$0xff] %v1796_v23  ;;  %v1269_v25 = vpop.f32.mrb[20].mxu1 }
 0x1b1   : > { %1861 = vst [vmem:[%s3248_s21 + $0x98] sm:$0xff] %v1797_v24  ;;  %v1462_v26 = vpop.f32.mrb[20].mxu0  ;;  %v1271_v28 = vpop.f32.mrb[21].mxu1 }
 0x1b2   : > { %v1463_v27 = vadd.f32 %v1462_v26, %v1269_v25  ;;  %v1464_v29 = vpop.f32.mrb[21].mxu0  ;;  %v1273_v31 = vpop.f32.mrb[22].mxu1 }
 0x1b3   : > { %v1465_v30 = vadd.f32 %v1464_v29, %v1271_v28  ;;  %v1466_v32 = vpop.f32.mrb[22].mxu0  ;;  %v1275_v35 = vpop.f32.mrb[23].mxu1 }
 0x1b4   : > { %v1798_v33 = vadd.f32 %v3242_v5, %v1463_v27  ;;  %v1467_v34 = vadd.f32 %v1466_v32, %v1273_v31  ;;  %v1468_v36 = vpop.f32.mrb[23].mxu0 }
 0x1b5   : > { %v1799_v37 = vadd.f32 %v3244_v8, %v1465_v30  ;;  %v1469_v38 = vadd.f32 %v1468_v36, %v1275_v35 }
 0x1b6   : > { %1862 = vst [vmem:[%s3248_s21 + $0xa0] sm:$0xff] %v1798_v33  ;;  %v1800_v39 = vadd.f32 %v3242_v5, %v1467_v34 }
 0x1b7   : > { %1863 = vst [vmem:[%s3248_s21 + $0xa8] sm:$0xff] %v1799_v37  ;;  %v1801_v40 = vadd.f32 %v3244_v8, %v1469_v38 }
 0x1b8   : > { %1864 = vst [vmem:[%s3248_s21 + $0xb0] sm:$0xff] %v1800_v39  ;;  %v1279_v41 = vpop.f32.mrb[24].mxu1 }
 0x1b9   : > { %1865 = vst [vmem:[%s3248_s21 + $0xb8] sm:$0xff] %v1801_v40  ;;  %v1472_v42 = vpop.f32.mrb[24].mxu0  ;;  %v1281_v44 = vpop.f32.mrb[25].mxu1 }
 0x1ba   : > { %v1473_v43 = vadd.f32 %v1472_v42, %v1279_v41  ;;  %v1474_v45 = vpop.f32.mrb[25].mxu0  ;;  %v1283_v47 = vpop.f32.mrb[26].mxu1 }
 0x1bb   : > { %v1475_v46 = vadd.f32 %v1474_v45, %v1281_v44  ;;  %v1476_v48 = vpop.f32.mrb[26].mxu0  ;;  %v1285_v51 = vpop.f32.mrb[27].mxu1 }
 0x1bc   : > { %v1802_v49 = vadd.f32 %v3242_v5, %v1473_v43  ;;  %v1477_v50 = vadd.f32 %v1476_v48, %v1283_v47  ;;  %v1478_v52 = vpop.f32.mrb[27].mxu0 }
 0x1bd   : > { %v1803_v53 = vadd.f32 %v3244_v8, %v1475_v46  ;;  %v1479_v54 = vadd.f32 %v1478_v52, %v1285_v51 }
 0x1be   : > { %1866 = vst [vmem:[%s3248_s21 + $0xc0] sm:$0xff] %v1802_v49  ;;  %v1804_v55 = vadd.f32 %v3242_v5, %v1477_v50 }
 0x1bf   : > { %1867 = vst [vmem:[%s3248_s21 + $0xc8] sm:$0xff] %v1803_v53  ;;  %v1805_v56 = vadd.f32 %v3244_v8, %v1479_v54 }
 0x1c0   : > { %1868 = vst [vmem:[%s3248_s21 + $0xd0] sm:$0xff] %v1804_v55  ;;  %v1289_v57 = vpop.f32.mrb[28].mxu1 }
 0x1c1   : > { %1869 = vst [vmem:[%s3248_s21 + $0xd8] sm:$0xff] %v1805_v56  ;;  %v1482_v58 = vpop.f32.mrb[28].mxu0  ;;  %v1291_v60 = vpop.f32.mrb[29].mxu1 }
 0x1c2   : > { %v1483_v59 = vadd.f32 %v1482_v58, %v1289_v57  ;;  %v1484_v61 = vpop.f32.mrb[29].mxu0  ;;  %v1293_v63 = vpop.f32.mrb[30].mxu1 }
 0x1c3   : > { %v1485_v62 = vadd.f32 %v1484_v61, %v1291_v60  ;;  %v1486_v0 = vpop.f32.mrb[30].mxu0  ;;  %v1295_v3 = vpop.f32.mrb[31].mxu1 }
 0x1c4   : > { %v1806_v1 = vadd.f32 %v3242_v5, %v1483_v59  ;;  %v1487_v2 = vadd.f32 %v1486_v0, %v1293_v63  ;;  %v1488_v4 = vpop.f32.mrb[31].mxu0 }
 0x1c5   : > { %v1807_v6 = vadd.f32 %v3244_v8, %v1485_v62  ;;  %v1489_v7 = vadd.f32 %v1488_v4, %v1295_v3 }
 0x1c6   : > { %1870 = vst [vmem:[%s3248_s21 + $0xe0] sm:$0xff] %v1806_v1  ;;  %v1808_v9 = vadd.f32 %v3242_v5, %v1487_v2 }
 0x1c7   : > { %1871 = vst [vmem:[%s3248_s21 + $0xe8] sm:$0xff] %v1807_v6  ;;  %v1809_v10 = vadd.f32 %v3244_v8, %v1489_v7 }
 0x1c8   : > { %1872 = vst [vmem:[%s3248_s21 + $0xf0] sm:$0xff] %v1808_v9  ;;  %v1299_v11 = vpop.f32.mrb[32].mxu1 }
 0x1c9   : > { %1873 = vst [vmem:[%s3248_s21 + $0xf8] sm:$0xff] %v1809_v10  ;;  %v1492_v12 = vpop.f32.mrb[32].mxu0  ;;  %v1301_v14 = vpop.f32.mrb[33].mxu1 }
 0x1ca   : > { %v1493_v13 = vadd.f32 %v1492_v12, %v1299_v11  ;;  %v1494_v15 = vpop.f32.mrb[33].mxu0  ;;  %v1303_v17 = vpop.f32.mrb[34].mxu1 }
 0x1cb   : > { %v1495_v16 = vadd.f32 %v1494_v15, %v1301_v14  ;;  %v1496_v18 = vpop.f32.mrb[34].mxu0  ;;  %v1305_v21 = vpop.f32.mrb[35].mxu1 }
 0x1cc   : > { %v1810_v19 = vadd.f32 %v3242_v5, %v1493_v13  ;;  %v1497_v20 = vadd.f32 %v1496_v18, %v1303_v17  ;;  %v1498_v22 = vpop.f32.mrb[35].mxu0 }
 0x1cd   : > { %v1811_v23 = vadd.f32 %v3244_v8, %v1495_v16  ;;  %v1499_v24 = vadd.f32 %v1498_v22, %v1305_v21 }
 0x1ce   : > { %1874 = vst [vmem:[%s3248_s21 + $0x100] sm:$0xff] %v1810_v19  ;;  %v1812_v25 = vadd.f32 %v3242_v5, %v1497_v20 }
 0x1cf   : > { %1875 = vst [vmem:[%s3248_s21 + $0x108] sm:$0xff] %v1811_v23  ;;  %v1813_v26 = vadd.f32 %v3244_v8, %v1499_v24 }
 0x1d0   : > { %1876 = vst [vmem:[%s3248_s21 + $0x110] sm:$0xff] %v1812_v25  ;;  %v1309_v27 = vpop.f32.mrb[36].mxu1 }
 0x1d1   : > { %1877 = vst [vmem:[%s3248_s21 + $0x118] sm:$0xff] %v1813_v26  ;;  %v1502_v28 = vpop.f32.mrb[36].mxu0  ;;  %v1311_v30 = vpop.f32.mrb[37].mxu1 }
 0x1d2   : > { %v1503_v29 = vadd.f32 %v1502_v28, %v1309_v27  ;;  %v1504_v31 = vpop.f32.mrb[37].mxu0  ;;  %v1313_v33 = vpop.f32.mrb[38].mxu1 }
 0x1d3   : > { %v1505_v32 = vadd.f32 %v1504_v31, %v1311_v30  ;;  %v1506_v34 = vpop.f32.mrb[38].mxu0  ;;  %v1315_v37 = vpop.f32.mrb[39].mxu1 }
 0x1d4   : > { %v1814_v35 = vadd.f32 %v3242_v5, %v1503_v29  ;;  %v1507_v36 = vadd.f32 %v1506_v34, %v1313_v33  ;;  %v1508_v38 = vpop.f32.mrb[39].mxu0 }
 0x1d5   : > { %v1815_v39 = vadd.f32 %v3244_v8, %v1505_v32  ;;  %v1509_v40 = vadd.f32 %v1508_v38, %v1315_v37 }
 0x1d6   : > { %1878 = vst [vmem:[%s3248_s21 + $0x120] sm:$0xff] %v1814_v35  ;;  %v1816_v41 = vadd.f32 %v3242_v5, %v1507_v36 }
 0x1d7   : > { %1879 = vst [vmem:[%s3248_s21 + $0x128] sm:$0xff] %v1815_v39  ;;  %v1817_v42 = vadd.f32 %v3244_v8, %v1509_v40 }
 0x1d8   : > { %1880 = vst [vmem:[%s3248_s21 + $0x130] sm:$0xff] %v1816_v41  ;;  %v1319_v43 = vpop.f32.mrb[40].mxu1 }
 0x1d9   : > { %1881 = vst [vmem:[%s3248_s21 + $0x138] sm:$0xff] %v1817_v42  ;;  %v1512_v44 = vpop.f32.mrb[40].mxu0  ;;  %v1321_v46 = vpop.f32.mrb[41].mxu1 }
 0x1da   : > { %v1513_v45 = vadd.f32 %v1512_v44, %v1319_v43  ;;  %v1514_v47 = vpop.f32.mrb[41].mxu0  ;;  %v1323_v49 = vpop.f32.mrb[42].mxu1 }
 0x1db   : > { %v1515_v48 = vadd.f32 %v1514_v47, %v1321_v46  ;;  %v1516_v50 = vpop.f32.mrb[42].mxu0  ;;  %v1325_v53 = vpop.f32.mrb[43].mxu1 }
 0x1dc   : > { %v1818_v51 = vadd.f32 %v3242_v5, %v1513_v45  ;;  %v1517_v52 = vadd.f32 %v1516_v50, %v1323_v49  ;;  %v1518_v54 = vpop.f32.mrb[43].mxu0 }
 0x1dd   : > { %v1819_v55 = vadd.f32 %v3244_v8, %v1515_v48  ;;  %v1519_v56 = vadd.f32 %v1518_v54, %v1325_v53 }
 0x1de   : > { %1882 = vst [vmem:[%s3248_s21 + $0x140] sm:$0xff] %v1818_v51  ;;  %v1820_v57 = vadd.f32 %v3242_v5, %v1517_v52 }
 0x1df   : > { %1883 = vst [vmem:[%s3248_s21 + $0x148] sm:$0xff] %v1819_v55  ;;  %v1821_v58 = vadd.f32 %v3244_v8, %v1519_v56 }
 0x1e0   : > { %1884 = vst [vmem:[%s3248_s21 + $0x150] sm:$0xff] %v1820_v57  ;;  %v1329_v59 = vpop.f32.mrb[44].mxu1 }
 0x1e1   : > { %1885 = vst [vmem:[%s3248_s21 + $0x158] sm:$0xff] %v1821_v58  ;;  %v1522_v60 = vpop.f32.mrb[44].mxu0  ;;  %v1331_v62 = vpop.f32.mrb[45].mxu1 }
 0x1e2   : > { %v1523_v61 = vadd.f32 %v1522_v60, %v1329_v59  ;;  %v1524_v63 = vpop.f32.mrb[45].mxu0  ;;  %v1333_v1 = vpop.f32.mrb[46].mxu1 }
 0x1e3   : > { %v1525_v0 = vadd.f32 %v1524_v63, %v1331_v62  ;;  %v1526_v2 = vpop.f32.mrb[46].mxu0  ;;  %v1335_v6 = vpop.f32.mrb[47].mxu1 }
 0x1e4   : > { %v1822_v3 = vadd.f32 %v3242_v5, %v1523_v61  ;;  %v1527_v4 = vadd.f32 %v1526_v2, %v1333_v1  ;;  %v1528_v7 = vpop.f32.mrb[47].mxu0 }
 0x1e5   : > { %v1823_v9 = vadd.f32 %v3244_v8, %v1525_v0  ;;  %v1529_v10 = vadd.f32 %v1528_v7, %v1335_v6 }
 0x1e6   : > { %1886 = vst [vmem:[%s3248_s21 + $0x160] sm:$0xff] %v1822_v3  ;;  %v1824_v11 = vadd.f32 %v3242_v5, %v1527_v4 }
 0x1e7   : > { %1887 = vst [vmem:[%s3248_s21 + $0x168] sm:$0xff] %v1823_v9  ;;  %v1825_v12 = vadd.f32 %v3244_v8, %v1529_v10 }
 0x1e8   : > { %1888 = vst [vmem:[%s3248_s21 + $0x170] sm:$0xff] %v1824_v11  ;;  %v1339_v13 = vpop.f32.mrb[48].mxu1 }
 0x1e9   : > { %1889 = vst [vmem:[%s3248_s21 + $0x178] sm:$0xff] %v1825_v12  ;;  %v1532_v14 = vpop.f32.mrb[48].mxu0  ;;  %v1341_v16 = vpop.f32.mrb[49].mxu1 }
 0x1ea   : > { %v1533_v15 = vadd.f32 %v1532_v14, %v1339_v13  ;;  %v1534_v17 = vpop.f32.mrb[49].mxu0  ;;  %v1343_v19 = vpop.f32.mrb[50].mxu1 }
 0x1eb   : > { %v1535_v18 = vadd.f32 %v1534_v17, %v1341_v16  ;;  %v1536_v20 = vpop.f32.mrb[50].mxu0  ;;  %v1345_v23 = vpop.f32.mrb[51].mxu1 }
 0x1ec   : > { %v1826_v21 = vadd.f32 %v3242_v5, %v1533_v15  ;;  %v1537_v22 = vadd.f32 %v1536_v20, %v1343_v19  ;;  %v1538_v24 = vpop.f32.mrb[51].mxu0 }
 0x1ed   : > { %v1827_v25 = vadd.f32 %v3244_v8, %v1535_v18  ;;  %v1539_v26 = vadd.f32 %v1538_v24, %v1345_v23 }
 0x1ee   : > { %1890 = vst [vmem:[%s3248_s21 + $0x180] sm:$0xff] %v1826_v21  ;;  %v1828_v27 = vadd.f32 %v3242_v5, %v1537_v22 }
 0x1ef   : > { %1891 = vst [vmem:[%s3248_s21 + $0x188] sm:$0xff] %v1827_v25  ;;  %v1829_v28 = vadd.f32 %v3244_v8, %v1539_v26 }
 0x1f0   : > { %1892 = vst [vmem:[%s3248_s21 + $0x190] sm:$0xff] %v1828_v27  ;;  %v1349_v29 = vpop.f32.mrb[52].mxu1 }
 0x1f1   : > { %1893 = vst [vmem:[%s3248_s21 + $0x198] sm:$0xff] %v1829_v28  ;;  %v1542_v30 = vpop.f32.mrb[52].mxu0  ;;  %v1351_v32 = vpop.f32.mrb[53].mxu1 }
 0x1f2   : > { %v1543_v31 = vadd.f32 %v1542_v30, %v1349_v29  ;;  %v1544_v33 = vpop.f32.mrb[53].mxu0  ;;  %v1353_v35 = vpop.f32.mrb[54].mxu1 }
 0x1f3   : > { %v1545_v34 = vadd.f32 %v1544_v33, %v1351_v32  ;;  %v1546_v36 = vpop.f32.mrb[54].mxu0  ;;  %v1355_v39 = vpop.f32.mrb[55].mxu1 }
 0x1f4   : > { %v1830_v37 = vadd.f32 %v3242_v5, %v1543_v31  ;;  %v1547_v38 = vadd.f32 %v1546_v36, %v1353_v35  ;;  %v1548_v40 = vpop.f32.mrb[55].mxu0 }
 0x1f5   : > { %v1831_v41 = vadd.f32 %v3244_v8, %v1545_v34  ;;  %v1549_v42 = vadd.f32 %v1548_v40, %v1355_v39 }
 0x1f6   : > { %1894 = vst [vmem:[%s3248_s21 + $0x1a0] sm:$0xff] %v1830_v37  ;;  %v1832_v43 = vadd.f32 %v3242_v5, %v1547_v38 }
 0x1f7   : > { %1895 = vst [vmem:[%s3248_s21 + $0x1a8] sm:$0xff] %v1831_v41  ;;  %v1833_v44 = vadd.f32 %v3244_v8, %v1549_v42 }
 0x1f8   : > { %1896 = vst [vmem:[%s3248_s21 + $0x1b0] sm:$0xff] %v1832_v43  ;;  %v1359_v45 = vpop.f32.mrb[56].mxu1 }
 0x1f9   : > { %1897 = vst [vmem:[%s3248_s21 + $0x1b8] sm:$0xff] %v1833_v44  ;;  %v1552_v46 = vpop.f32.mrb[56].mxu0  ;;  %v1361_v48 = vpop.f32.mrb[57].mxu1 }
 0x1fa   : > { %v1553_v47 = vadd.f32 %v1552_v46, %v1359_v45  ;;  %v1554_v49 = vpop.f32.mrb[57].mxu0  ;;  %v1363_v51 = vpop.f32.mrb[58].mxu1 }
 0x1fb   : > { %v1555_v50 = vadd.f32 %v1554_v49, %v1361_v48  ;;  %v1556_v52 = vpop.f32.mrb[58].mxu0  ;;  %v1365_v55 = vpop.f32.mrb[59].mxu1 }
 0x1fc   : > { %v1834_v53 = vadd.f32 %v3242_v5, %v1553_v47  ;;  %v1557_v54 = vadd.f32 %v1556_v52, %v1363_v51  ;;  %v1558_v56 = vpop.f32.mrb[59].mxu0 }
 0x1fd   : > { %v1835_v57 = vadd.f32 %v3244_v8, %v1555_v50  ;;  %v1559_v58 = vadd.f32 %v1558_v56, %v1365_v55 }
 0x1fe   : > { %1898 = vst [vmem:[%s3248_s21 + $0x1c0] sm:$0xff] %v1834_v53  ;;  %v1836_v59 = vadd.f32 %v3242_v5, %v1557_v54 }
 0x1ff   : > { %1899 = vst [vmem:[%s3248_s21 + $0x1c8] sm:$0xff] %v1835_v57  ;;  %v1837_v60 = vadd.f32 %v3244_v8, %v1559_v58 }
 0x200   : > { %1900 = vst [vmem:[%s3248_s21 + $0x1d0] sm:$0xff] %v1836_v59  ;;  %v1369_v61 = vpop.f32.mrb[60].mxu1 }
 0x201   : > { %1901 = vst [vmem:[%s3248_s21 + $0x1d8] sm:$0xff] %v1837_v60  ;;  %v1562_v62 = vpop.f32.mrb[60].mxu0  ;;  %v1371_v0 = vpop.f32.mrb[61].mxu1 }
 0x202   : > { %v1563_v63 = vadd.f32 %v1562_v62, %v1369_v61  ;;  %v1564_v1 = vpop.f32.mrb[61].mxu0  ;;  %v1373_v3 = vpop.f32.mrb[62].mxu1 }
 0x203   : > { %v1565_v2 = vadd.f32 %v1564_v1, %v1371_v0  ;;  %v1566_v4 = vpop.f32.mrb[62].mxu0  ;;  %v1375_v9 = vpop.f32.mrb[63].mxu1 }
 0x204   : > { %v1838_v6 = vadd.f32 %v3242_v5, %v1563_v63  ;;  %v1567_v7 = vadd.f32 %v1566_v4, %v1373_v3  ;;  %v1568_v10 = vpop.f32.mrb[63].mxu0 }
 0x205   : > { %v1839_v11 = vadd.f32 %v3244_v8, %v1565_v2  ;;  %v1569_v12 = vadd.f32 %v1568_v10, %v1375_v9 }
 0x206   : > { %1902 = vst [vmem:[%s3248_s21 + $0x1e0] sm:$0xff] %v1838_v6  ;;  %v1840_v13 = vadd.f32 %v3242_v5, %v1567_v7 }
 0x207   : > { %1903 = vst [vmem:[%s3248_s21 + $0x1e8] sm:$0xff] %v1839_v11  ;;  %v1841_v14 = vadd.f32 %v3244_v8, %v1569_v12 }
 0x208   : > { %1904 = vst [vmem:[%s3248_s21 + $0x1f0] sm:$0xff] %v1840_v13 }
 0x209   : > { %1905 = vst [vmem:[%s3248_s21 + $0x1f8] sm:$0xff] %v1841_v14 }
 0x20a   : > { %2673 = shalt.err (!%p2670_p2)
}
 0x20b   : > { %s2674_s5 = scalar_lea.hbm %s3376_s4, 8192  ;;  %s2678_s22 = scalar_lea.hbm %s3511_s10, 32768 }
 0x20c   : > { %p2675_p5 = scmp.ne.s32.totalorder %s3376_s4, %s2674_s5  ;;  %p2679_p13 = scmp.lt.u32.totalorder %s3376_s4, %s3511_s10 }
 0x20d   : > { %p2680_p6 = scmp.lt.u32.totalorder %s2678_s22, %s2674_s5  ;;  %p2682_p12 = scmp.lt.u32.totalorder %s2674_s5, %s3376_s4 }
 0x20e   : > { %p2676_p3 = pnand %p2675_p5, %p3512_p9 }
 0x20f   : > { %p2681_p1 = por %p2680_p6, %p2679_p13 }
 0x210   : > { %p2677_p7 = pneg %p2676_p3 }
 0x211   : > { %p2683_p0 = por %p2682_p12, %p2681_p1 }
 0x213   : > { %p2684_p4 = pnand %p2683_p0, %p2677_p7 }
 0x215   : > { %2687 = shalt.err (!%p2684_p4)
}
 0x216   : > { %s2819_s18 = smov 256   ;;  %s2820_s9 = smov 512  }
 0x217   : > { %s2821_s8 = smov 16  }
 0x218   : > { %2274 = dma.vmem_to_hbm [thread:$0]  (%p3512_p9), %s3380_s27, 8192, %s3376_s4, %s3388_s11, %s2819_s18, %s2820_s9, %s2821_s8  }
 0x219 PF: > { %p2288_p10 = scmp.ge.s32.totalorder %s2810_s25, 2  ;;  %s1938_s15 = sand.u32 1, %s2758_s12  }
 0x21a   : > { %p3513_p8 = scmp.ne.s32.totalorder %s3502_s30, 0  ;;  %s1939_s24 = scalar_lea.sflag [#allocation5], %s1938_s15 }
 0x21c   : > { %p2284_p11 = pnand %p2288_p10, %p3513_p8 }
 0x21e   : > { %2753 = dma.done.wait (!%p2284_p11), %s1939_s24, 8192  }
 0x21f   : > { %2755 = vsyncadd (!%p2284_p11), %s1939_s24, 4294959104  ;;  %s22_s25 = sadd.s32 1, %s2810_s25   ;;  %s3515_s27 = sld [smem:[#allocation16_spill]] }
 0x220   : > { %p3417_p2 = scmp.ge.s32.totalorder %s22_s25, 6   ;;  %s3516_s22 = sld [smem:[#allocation13_spill]] }
 0x221   : > { %s3517_s30 = sld [smem:[#allocation14_spill]]  ;;  %s3518_s24 = sld [smem:[#allocation15_spill]] }
 0x222   : > { %s3519_s12 = smov %s2762_s13  ;;  %s3520_s13 = smov %s2766_s14 }
 0x223   : > { %s3521_s14 = smov %s3035_s3  ;;  %s3522_s15 = smov %s2774_s16 }
 0x224   : > { %s3523_s16 = smov %s2778_s17  ;;  %s3525_s18 = smov %s2786_s19 }
 0x225   : > { %s3524_s17 = smov %s3515_s27  ;;  %s3526_s19 = smov %s2790_s20 }
 0x226   : > { %s3527_s20 = smov %s3032_s6  ;;  %s3528_s21 = smov %s2802_s23 }
 0x227   : > { %s3529_s23 = smov %s3517_s30  ;;  %21 = sbr.rel (!%p3417_p2) target bundleno = 16 (0x10), region = 101 }
 0x22e   :  { %1944 = vsyncpa [#allocation4], 1 }
 0x22f   :  { %1946 = vsyncpa [#allocation4 + $0x1], 1 }
 0x230   :  { %1947 = vsyncpa [#allocation7], 1 }
 0x231   :  { %1949 = vsyncpa [#allocation7 + $0x1], 1 }
 0x232   :  { %1950 = vsyncpa [#allocation5], 1 }
 0x233   :  { %1952 = vsyncpa [#allocation5 + $0x1], 1 }

</bundles_post_ra>
